<compile_context>
chip_gen: v6e
topology: v6e:2x2x1
jax: 0.10.0
libtpu: 0.0.40
codegen_flags: <defaults>
</compile_context>

<pallas_src>
import functools

import jax
import jax.numpy as jnp
import numpy as np
from jax.experimental import pallas as pl
from jax.experimental.pallas import tpu as pltpu

# Model dims.
D_PIECE, D_BOARD, D_PIECES = 4, 4 * 4 * 5, 16
K_RAW = D_PIECE + D_BOARD + D_PIECES     # 100
K_PAD = 128                              # fused-input features padded to a lane tile
H_IN = 256                               # per-branch hidden width
H_FUSED = 3 * H_IN                       # 768
H_MID = 64
N_OUT = 16

TILE_B = 256                             # batch tile (>= MXU rows on all gens)


# --------------------------------------------------------------------------
# Kernel
# --------------------------------------------------------------------------
def placenet_kernel(x_ref, mask_ref, w_in_ref, b_in_ref, wm_ref, bm_ref,
                    wo_ref, bo_ref, out_ref):
    f32 = jnp.float32
    bf16 = jnp.bfloat16

    # Fused input branches: one block-diagonal bf16 matmul instead of three
    # tiny ones.  h columns [0:256) = pieceIn, [256:512) = boardIn,
    # [512:768) = piecesIn (each already includes its own bias).
    h = jnp.dot(x_ref[...], w_in_ref[...], preferred_element_type=f32)
    h = h + b_in_ref[...]
    h = jnp.maximum(h, 0.0)
    # z = relu(x1) + relu(x2) + relu(y): sum the three 128-aligned blocks.
    z = h[:, 0:H_IN] + h[:, H_IN:2 * H_IN] + h[:, 2 * H_IN:3 * H_IN]

    # middle: Linear(256 -> 64) + relu
    z = jnp.dot(z.astype(bf16), wm_ref[...], preferred_element_type=f32)
    z = jnp.maximum(z + bm_ref[...], 0.0)

    # placeOut: Linear(64 -> 16)
    logits = jnp.dot(z.astype(bf16), wo_ref[...], preferred_element_type=f32)
    logits = logits + bo_ref[...]

    # softmax -> legality mask -> L1 renorm.  The softmax denominator cancels
    # against the L1 re-normalization, so normalize exp * mask directly.
    # Max-subtraction and the 1e-12 clamp keep the edge cases safe.
    m = jnp.max(logits, axis=-1, keepdims=True)
    e = jnp.exp(logits - m)
    masked = e * mask_ref[...]
    denom = jnp.maximum(jnp.sum(masked, axis=-1, keepdims=True), 1e-12)
    out_ref[...] = masked * pl.reciprocal(denom, approx=True)


# --------------------------------------------------------------------------
# Parameters
# --------------------------------------------------------------------------
def _init_linear(key, fan_in, fan_out):
    # Mimics PyTorch's default Linear init: U(-1/sqrt(fan_in), 1/sqrt(fan_in)).
    kw, kb = jax.random.split(key)
    bound = 1.0 / (fan_in ** 0.5)
    w = jax.random.uniform(kw, (fan_in, fan_out), jnp.float32, -bound, bound)
    b = jax.random.uniform(kb, (1, fan_out), jnp.float32, -bound, bound)
    return w, b


def init_placenet_params(key):
    k1, k2, k3, k4, k5 = jax.random.split(key, 5)
    w1, b1 = _init_linear(k1, D_PIECE, H_IN)    # pieceIn
    w2, b2 = _init_linear(k2, D_BOARD, H_IN)    # boardIn
    w3, b3 = _init_linear(k3, D_PIECES, H_IN)   # piecesIn
    wm, bm = _init_linear(k4, H_IN, H_MID)      # middle
    wo, bo = _init_linear(k5, H_MID, N_OUT)     # placeOut
    return (w1, b1, w2, b2, w3, b3, wm, bm, wo, bo)


def fuse_placenet_params(params):
    """Build the block-diagonal fused input weight + bf16 weights (done once)."""
    w1, b1, w2, b2, w3, b3, wm, bm, wo, bo = params
    w_in = jnp.zeros((K_PAD, H_FUSED), jnp.float32)
    w_in = w_in.at[0:D_PIECE, 0:H_IN].set(w1)
    w_in = w_in.at[D_PIECE:D_PIECE + D_BOARD, H_IN:2 * H_IN].set(w2)
    w_in = w_in.at[D_PIECE + D_BOARD:K_RAW, 2 * H_IN:3 * H_IN].set(w3)
    b_in = jnp.concatenate([b1, b2, b3], axis=-1)          # (1, 768) f32
    return (w_in.astype(jnp.bfloat16), b_in,
            wm.astype(jnp.bfloat16), bm,
            wo.astype(jnp.bfloat16), bo)


# --------------------------------------------------------------------------
# pallas_call wrapper
# --------------------------------------------------------------------------
def _placenet_pallas(x, mask, w_in, b_in, wm, bm, wo, bo):
    bpad = x.shape[0]
    grid = (bpad // TILE_B,)
    row = lambda i: (i, 0)      # batch-tiled operands
    const = lambda i: (0, 0)    # weights: same block every step -> VMEM-resident

    return pl.pallas_call(
        placenet_kernel,
        out_shape=jax.ShapeDtypeStruct((bpad, N_OUT), jnp.float32),
        grid_spec=pltpu.PrefetchScalarGridSpec(
            num_scalar_prefetch=0,
            grid=grid,
            in_specs=[
                pl.BlockSpec((TILE_B, K_PAD), row),      # fused input (bf16)
                pl.BlockSpec((TILE_B, N_OUT), row),      # legality mask (f32)
                pl.BlockSpec((K_PAD, H_FUSED), const),   # fused input weight
                pl.BlockSpec((1, H_FUSED), const),       # fused input bias
                pl.BlockSpec((H_IN, H_MID), const),      # middle weight
                pl.BlockSpec((1, H_MID), const),         # middle bias
                pl.BlockSpec((H_MID, N_OUT), const),     # placeOut weight
                pl.BlockSpec((1, N_OUT), const),         # placeOut bias
            ],
            out_specs=pl.BlockSpec((TILE_B, N_OUT), row),
        ),
        compiler_params=pltpu.CompilerParams(
            dimension_semantics=("parallel",)),          # v7x: split batch over 2 TCs
    )(x, mask, w_in, b_in, wm, bm, wo, bo)


@jax.jit
def placenet_forward_batched(fused_params, board, pieces, piece):
    """board: (B,4,4,5), pieces: (B,16), piece: (B,4) -> (B,16) f32."""
    board = board.astype(jnp.float32)
    pieces = pieces.astype(jnp.float32)
    piece = piece.astype(jnp.float32)

    B = board.shape[0]
    board_flat = board.reshape(B, D_BOARD)                   # torch.flatten(board)
    mask = 1.0 - board[:, :, :, 0].reshape(B, N_OUT)         # 1 - board[:,:,0].flatten()

    x = jnp.concatenate([piece, board_flat, pieces], axis=-1)  # (B, 100)
    x = jnp.pad(x, ((0, 0), (0, K_PAD - K_RAW)))               # (B, 128)

    bpad = ((B + TILE_B - 1) // TILE_B) * TILE_B
    x = jnp.pad(x, ((0, bpad - B), (0, 0))).astype(jnp.bfloat16)
    mask = jnp.pad(mask, ((0, bpad - B), (0, 0)))

    out = _placenet_pallas(x, mask, *fused_params)
    return out[:B]


def placenet_forward(fused_params, board, pieces, piece):
    """Single-sample API matching the original module's forward signature."""
    out = placenet_forward_batched(fused_params, board[None], pieces[None],
                                   piece[None])
    return out[0]


# --------------------------------------------------------------------------
# Pure-JAX reference (torch semantics, same bf16 weight/activation quantization)
# --------------------------------------------------------------------------
def placenet_reference(params, board, pieces, piece):
    w1, b1, w2, b2, w3, b3, wm, bm, wo, bo = params
    f32, bf16 = jnp.float32, jnp.bfloat16

    def lin(x, w, b):
        return jnp.dot(x.astype(bf16).astype(f32),
                       w.astype(bf16).astype(f32)) + b

    B = board.shape[0]
    board_flat = board.reshape(B, D_BOARD)
    x1 = lin(piece, w1, b1)
    x2 = lin(board_flat, w2, b2)
    y = lin(pieces, w3, b3)
    z = jnp.maximum(x1, 0.0) + jnp.maximum(x2, 0.0) + jnp.maximum(y, 0.0)
    z = jnp.maximum(lin(z, wm, bm), 0.0)
    logits = lin(z, wo, bo)
    p = jax.nn.softmax(logits, axis=-1)
    mask = 1.0 - board[:, :, :, 0].reshape(B, N_OUT)
    masked = p * mask
    denom = jnp.maximum(jnp.sum(jnp.abs(masked), axis=-1, keepdims=True), 1e-12)
    return masked / denom


# TODO(synk): play_rand / np.random.choice action sampling is host-side policy
# logic, not part of the forward pass, so it is intentionally not in the kernel.

if __name__ == "__main__":
    key = jax.random.PRNGKey(0)
    kp, kb, kr, kpc, kpce = jax.random.split(key, 5)

    params = init_placenet_params(kp)
    fused = fuse_placenet_params(params)

    # Small deterministic batched inputs (batch=4); kernel pads/tiles internally.
    B = 4
    occ = jax.random.bernoulli(kb, 0.3, (B, 4, 4, 1)).astype(jnp.float32)
    rest = jax.random.uniform(kr, (B, 4, 4, 4), jnp.float32)
    board = jnp.concatenate([occ, rest], axis=-1)            # (B, 4, 4, 5)
    pieces = jax.random.uniform(kpc, (B, 16), jnp.float32)
    piece = jax.random.uniform(kpce, (B, 4), jnp.float32)

    out = placenet_forward_batched(fused, board, pieces, piece)
    out = jax.block_until_ready(out)
    assert out.shape == (B, N_OUT)

    ref = placenet_reference(params, board, pieces, piece)
    np.testing.assert_allclose(np.asarray(out), np.asarray(ref),
                               atol=3e-3, rtol=3e-2)

    # Single-sample path (original module signature).
    out1 = jax.block_until_ready(placenet_forward(fused, board[0], pieces[0], piece[0]))
    assert out1.shape == (N_OUT,)

    print("KERNEL_OK")
</pallas_src>

<mosaic_0001>
module attributes {stable_mosaic.version = 11 : i64} {
  func.func @placenet_kernel(%arg0: i32, %arg1: memref<256x128xbf16, #tpu.memory_space<vmem>>, %arg2: memref<256x16xf32, #tpu.memory_space<vmem>>, %arg3: memref<128x768xbf16, #tpu.memory_space<vmem>>, %arg4: memref<1x768xf32, #tpu.memory_space<vmem>>, %arg5: memref<256x64xbf16, #tpu.memory_space<vmem>>, %arg6: memref<1x64xf32, #tpu.memory_space<vmem>>, %arg7: memref<64x16xbf16, #tpu.memory_space<vmem>>, %arg8: memref<1x16xf32, #tpu.memory_space<vmem>>, %arg9: memref<256x16xf32, #tpu.memory_space<vmem>>) attributes {dimension_semantics = [#tpu.dimension_semantics<parallel>], iteration_bounds = array<i64: 1>, scalar_prefetch = 0 : i64, scratch_operands = 0 : i64, tpu.core_type = #tpu.core_type<tc>, window_params = [{transform_indices = @transform_0, window_bounds = array<i64: 256, 128>}, {transform_indices = @transform_1, window_bounds = array<i64: 256, 16>}, {pipeline_mode = #tpu.pipeline_mode<synchronous>, transform_indices = @transform_2, window_bounds = array<i64: 128, 768>}, {pipeline_mode = #tpu.pipeline_mode<synchronous>, transform_indices = @transform_3, window_bounds = array<i64: 1, 768>}, {pipeline_mode = #tpu.pipeline_mode<synchronous>, transform_indices = @transform_4, window_bounds = array<i64: 256, 64>}, {pipeline_mode = #tpu.pipeline_mode<synchronous>, transform_indices = @transform_5, window_bounds = array<i64: 1, 64>}, {pipeline_mode = #tpu.pipeline_mode<synchronous>, transform_indices = @transform_6, window_bounds = array<i64: 64, 16>}, {pipeline_mode = #tpu.pipeline_mode<synchronous>, transform_indices = @transform_7, window_bounds = array<i64: 1, 16>}, {transform_indices = @transform_8, window_bounds = array<i64: 256, 16>}]} {
    %c0 = arith.constant 0 : index
    %c0_0 = arith.constant 0 : index
    %0 = vector.load %arg1[%c0, %c0_0] : memref<256x128xbf16, #tpu.memory_space<vmem>>, vector<256x128xbf16>
    %c0_1 = arith.constant 0 : index
    %c0_2 = arith.constant 0 : index
    %1 = vector.load %arg3[%c0_1, %c0_2] : memref<128x768xbf16, #tpu.memory_space<vmem>>, vector<128x768xbf16>
    %cst = arith.constant dense<0.000000e+00> : vector<256x768xf32>
    %2 = tpu.matmul %0, %1, %cst {dimension_numbers = #tpu.dot_dimension_numbers<[1], [0], [0], [1], [0, 0, 1, 1], [], []>} : vector<256x128xbf16>, vector<128x768xbf16>, vector<256x768xf32> -> vector<256x768xf32>
    %c0_3 = arith.constant 0 : index
    %c0_4 = arith.constant 0 : index
    %3 = vector.load %arg4[%c0_3, %c0_4] : memref<1x768xf32, #tpu.memory_space<vmem>>, vector<1x768xf32>
    %4 = vector.broadcast %3 : vector<1x768xf32> to vector<256x768xf32>
    %5 = arith.addf %2, %4 : vector<256x768xf32>
    %cst_5 = arith.constant 0.000000e+00 : f32
    %6 = vector.broadcast %cst_5 : f32 to vector<256x768xf32>
    %7 = arith.maximumf %5, %6 : vector<256x768xf32>
    %8 = vector.extract_strided_slice %7 {offsets = [0, 0], sizes = [256, 256], strides = [1, 1]} : vector<256x768xf32> to vector<256x256xf32>
    %9 = vector.extract_strided_slice %7 {offsets = [0, 256], sizes = [256, 256], strides = [1, 1]} : vector<256x768xf32> to vector<256x256xf32>
    %10 = arith.addf %8, %9 : vector<256x256xf32>
    %11 = vector.extract_strided_slice %7 {offsets = [0, 512], sizes = [256, 256], strides = [1, 1]} : vector<256x768xf32> to vector<256x256xf32>
    %12 = arith.addf %10, %11 : vector<256x256xf32>
    %13 = arith.truncf %12 : vector<256x256xf32> to vector<256x256xbf16>
    %c0_6 = arith.constant 0 : index
    %c0_7 = arith.constant 0 : index
    %14 = vector.load %arg5[%c0_6, %c0_7] : memref<256x64xbf16, #tpu.memory_space<vmem>>, vector<256x64xbf16>
    %cst_8 = arith.constant dense<0.000000e+00> : vector<256x64xf32>
    %15 = tpu.matmul %13, %14, %cst_8 {dimension_numbers = #tpu.dot_dimension_numbers<[1], [0], [0], [1], [0, 0, 1, 1], [], []>} : vector<256x256xbf16>, vector<256x64xbf16>, vector<256x64xf32> -> vector<256x64xf32>
    %c0_9 = arith.constant 0 : index
    %c0_10 = arith.constant 0 : index
    %16 = vector.load %arg6[%c0_9, %c0_10] : memref<1x64xf32, #tpu.memory_space<vmem>>, vector<1x64xf32>
    %17 = vector.broadcast %16 : vector<1x64xf32> to vector<256x64xf32>
    %18 = arith.addf %15, %17 : vector<256x64xf32>
    %cst_11 = arith.constant 0.000000e+00 : f32
    %19 = vector.broadcast %cst_11 : f32 to vector<256x64xf32>
    %20 = arith.maximumf %18, %19 : vector<256x64xf32>
    %21 = arith.truncf %20 : vector<256x64xf32> to vector<256x64xbf16>
    %c0_12 = arith.constant 0 : index
    %c0_13 = arith.constant 0 : index
    %22 = vector.load %arg7[%c0_12, %c0_13] : memref<64x16xbf16, #tpu.memory_space<vmem>>, vector<64x16xbf16>
    %cst_14 = arith.constant dense<0.000000e+00> : vector<256x16xf32>
    %23 = tpu.matmul %21, %22, %cst_14 {dimension_numbers = #tpu.dot_dimension_numbers<[1], [0], [0], [1], [0, 0, 1, 1], [], []>} : vector<256x64xbf16>, vector<64x16xbf16>, vector<256x16xf32> -> vector<256x16xf32>
    %c0_15 = arith.constant 0 : index
    %c0_16 = arith.constant 0 : index
    %24 = vector.load %arg8[%c0_15, %c0_16] : memref<1x16xf32, #tpu.memory_space<vmem>>, vector<1x16xf32>
    %25 = vector.broadcast %24 : vector<1x16xf32> to vector<256x16xf32>
    %26 = arith.addf %23, %25 : vector<256x16xf32>
    %cst_17 = arith.constant dense<0xFF800000> : vector<256xf32>
    %27 = vector.multi_reduction <maximumf>, %26, %cst_17 [1] : vector<256x16xf32> to vector<256xf32>
    %28 = vector.shape_cast %27 : vector<256xf32> to vector<256x1xf32>
    %29 = vector.broadcast %28 : vector<256x1xf32> to vector<256x16xf32>
    %30 = arith.subf %26, %29 : vector<256x16xf32>
    %31 = math.exp %30 : vector<256x16xf32>
    %c0_18 = arith.constant 0 : index
    %c0_19 = arith.constant 0 : index
    %32 = vector.load %arg2[%c0_18, %c0_19] : memref<256x16xf32, #tpu.memory_space<vmem>>, vector<256x16xf32>
    %33 = arith.mulf %31, %32 : vector<256x16xf32>
    %cst_20 = arith.constant dense<0.000000e+00> : vector<256xf32>
    %34 = vector.multi_reduction <add>, %33, %cst_20 [1] : vector<256x16xf32> to vector<256xf32>
    %35 = vector.shape_cast %34 : vector<256xf32> to vector<256x1xf32>
    %cst_21 = arith.constant 9.99999996E-13 : f32
    %36 = vector.broadcast %cst_21 : f32 to vector<256x1xf32>
    %37 = arith.maximumf %35, %36 : vector<256x1xf32>
    %38 = tpu.reciprocal %37 {approx = true} : vector<256x1xf32> -> vector<256x1xf32>
    %39 = vector.broadcast %38 : vector<256x1xf32> to vector<256x16xf32>
    %40 = arith.mulf %33, %39 : vector<256x16xf32>
    %c0_22 = arith.constant 0 : index
    %c0_23 = arith.constant 0 : index
    %41 = vector.load %arg9[%c0_22, %c0_23] : memref<256x16xf32, #tpu.memory_space<vmem>>, vector<256x16xf32>
    tpu.vector_store %arg9[%c0_22, %c0_23], %40 {strides = array<i32>} : memref<256x16xf32, #tpu.memory_space<vmem>>, vector<256x16xf32>,
    return
  }
  func.func @transform_0(%arg0: i32) -> (i32, i32) {
    %c0_i32 = arith.constant 0 : i32
    %c0_i32_0 = arith.constant 0 : i32
    return %arg0, %c0_i32 : i32, i32
  }
  func.func @transform_1(%arg0: i32) -> (i32, i32) {
    %c0_i32 = arith.constant 0 : i32
    %c0_i32_0 = arith.constant 0 : i32
    return %arg0, %c0_i32 : i32, i32
  }
  func.func @transform_2(%arg0: i32) -> (i32, i32) {
    %c0_i32 = arith.constant 0 : i32
    %c0_i32_0 = arith.constant 0 : i32
    %c0_i32_1 = arith.constant 0 : i32
    return %c0_i32, %c0_i32_0 : i32, i32
  }
  func.func @transform_3(%arg0: i32) -> (i32, i32) {
    %c0_i32 = arith.constant 0 : i32
    %c0_i32_0 = arith.constant 0 : i32
    %c0_i32_1 = arith.constant 0 : i32
    return %c0_i32, %c0_i32_0 : i32, i32
  }
  func.func @transform_4(%arg0: i32) -> (i32, i32) {
    %c0_i32 = arith.constant 0 : i32
    %c0_i32_0 = arith.constant 0 : i32
    %c0_i32_1 = arith.constant 0 : i32
    return %c0_i32, %c0_i32_0 : i32, i32
  }
  func.func @transform_5(%arg0: i32) -> (i32, i32) {
    %c0_i32 = arith.constant 0 : i32
    %c0_i32_0 = arith.constant 0 : i32
    %c0_i32_1 = arith.constant 0 : i32
    return %c0_i32, %c0_i32_0 : i32, i32
  }
  func.func @transform_6(%arg0: i32) -> (i32, i32) {
    %c0_i32 = arith.constant 0 : i32
    %c0_i32_0 = arith.constant 0 : i32
    %c0_i32_1 = arith.constant 0 : i32
    return %c0_i32, %c0_i32_0 : i32, i32
  }
  func.func @transform_7(%arg0: i32) -> (i32, i32) {
    %c0_i32 = arith.constant 0 : i32
    %c0_i32_0 = arith.constant 0 : i32
    %c0_i32_1 = arith.constant 0 : i32
    return %c0_i32, %c0_i32_0 : i32, i32
  }
  func.func @transform_8(%arg0: i32) -> (i32, i32) {
    %c0_i32 = arith.constant 0 : i32
    %c0_i32_0 = arith.constant 0 : i32
    return %arg0, %c0_i32 : i32, i32
  }
}

</mosaic_0001>

<bundles_post_ra>
// kernel: placenet_forward_batched.1
= control target key start
LH: loop header
LB: loop body
LE: loop exit
PB: predicated region body
PF: predicated region fallthrough
CT: control target
= control target key end

     0   :  { %v3014_v1 = vmov 0   ;;  %vm1792_vm0 = vcmask 523264   ;;  %vm2002_vm1 = vcmask 130048   ;;  %s4858_s2 = inlined_call_operand.vmem [shape: bf16[128,768], index: 2, kind: input, shape index: {}]   ;;  %s4859_s0 = inlined_call_operand.vmem [shape: bf16[256,128], index: 0, kind: input, shape index: {}]   ;;  %s4860_s4 = inlined_call_operand.vmem [shape: bf16[256,64], index: 4, kind: input, shape index: {}]   ;;  %s4861_s3 = inlined_call_operand.vmem [shape: f32[1,768], index: 3, kind: input, shape index: {}]   ;;  %s4862_s6 = inlined_call_operand.vmem [shape: bf16[64,16], index: 6, kind: input, shape index: {}]   ;;  %s4863_s5 = inlined_call_operand.vmem [shape: f32[1,64], index: 5, kind: input, shape index: {}]   ;;  %s4864_s7 = inlined_call_operand.vmem [shape: f32[1,16], index: 7, kind: input, shape index: {}]   ;;  %s4865_s1 = inlined_call_operand.vmem [shape: f32[256,16], index: 1, kind: input, shape index: {}]   ;;  %s4866_s8 = inlined_call_operand.vmem [shape: f32[256,16], index: 8, kind: output, shape index: {}]  }
   0x1   :  { %v2778_v0 = vld [vmem:[%s4858_s2 + $0x154] ss:$24 sps:$4 sm:$0xff]   ;;  %510 = vmatprep.mubr.bf16.mxu0 %v3014_v1  ;;  %630 = vmatprep.mubr.bf16.mxu1 %v3014_v1  ;;  %v2780_v2 = vld [vmem:[%s4858_s2 + $0x150] ss:$24 sps:$4 sm:$0xff]   ;;  %v2781_v3 = vld [vmem:[%s4858_s2 + $0x124] ss:$24 sps:$4 sm:$0xff]  }
   0x2   :  { %478 = vmatprep.subr.bf16.mxu0 %v2778_v0  ;;  %2761 = vmatprep.subr.bf16.mxu1 %v2778_v0  ;;  %v2783_v4 = vld [vmem:[%s4858_s2 + $0x120] ss:$24 sps:$4 sm:$0xff]   ;;  %v2784_v5 = vld [vmem:[%s4858_s2 + $0xf4] ss:$24 sps:$4 sm:$0xff]   ;;  %v2786_v6 = vld [vmem:[%s4858_s2 + $0xf0] ss:$24 sps:$4 sm:$0xff]  }
   0x3   :  { %479 = vmatpush1.bf16.msra.mxu0 %v2780_v2  ;;  %2769 = vmatpush1.bf16.msra.mxu1 %v2780_v2  ;;  %v2787_v7 = vld [vmem:[%s4858_s2 + $0xc4] ss:$24 sps:$4 sm:$0xff]   ;;  %v2789_v8 = vld [vmem:[%s4858_s2 + $0xc0] ss:$24 sps:$4 sm:$0xff]   ;;  %v2790_v9 = vld [vmem:[%s4858_s2 + $0x94] ss:$24 sps:$4 sm:$0xff]  }
   0x4   :  { %480 = vmatprep.subr.bf16.mxu0 %v2781_v3  ;;  %2762 = vmatprep.subr.bf16.mxu1 %v2781_v3  ;;  %v2792_v10 = vld [vmem:[%s4858_s2 + $0x90] ss:$24 sps:$4 sm:$0xff]   ;;  %v2793_v11 = vld [vmem:[%s4858_s2 + $0x64] ss:$24 sps:$4 sm:$0xff]   ;;  %v2795_v12 = vld [vmem:[%s4858_s2 + $0x60] ss:$24 sps:$4 sm:$0xff]  }
   0x5   :  { %v2796_v13 = vld [vmem:[%s4858_s2 + $0x34] ss:$24 sps:$4 sm:$0xff]   ;;  %v2798_v14 = vld [vmem:[%s4858_s2 + $0x30] ss:$24 sps:$4 sm:$0xff]   ;;  %v2799_v15 = vld [vmem:[%s4858_s2 + $0x4] ss:$24 sps:$4 sm:$0xff]  }
   0x6   :  { %v2801_v16 = vld [vmem:[%s4858_s2] ss:$24 sps:$4 sm:$0xff]   ;;  %v2806_v17 = vld [vmem:[%s4858_s2 + $0x15c] ss:$24 sps:$4 sm:$0xff]   ;;  %v2812_v23 = vld [vmem:[%s4858_s2 + $0x12c] ss:$24 sps:$4 sm:$0xff]  }
   0x7   :  { %481 = vmatpush1.bf16.msra.mxu0 %v2783_v4  ;;  %2770 = vmatpush1.bf16.msra.mxu1 %v2783_v4  ;;  %v2809_v18 = vld [vmem:[%s4858_s2 + $0x164] ss:$24 sps:$4 sm:$0xff]   ;;  %v2804_v21 = vld [vmem:[%s4858_s2 + $0x158] ss:$24 sps:$4 sm:$0xff]   ;;  %v2823_v24 = vld [vmem:[%s4858_s2 + $0x134] ss:$24 sps:$4 sm:$0xff]  }
   0x8   :  { %482 = vmatprep.subr.bf16.mxu0 %v2784_v5  ;;  %2763 = vmatprep.subr.bf16.mxu1 %v2784_v5  ;;  %v3119_v19 = vld [vmem:[%s4859_s0] sm:$0xff]   ;;  %v2817_v26 = vld [vmem:[%s4858_s2 + $0xfc] ss:$24 sps:$4 sm:$0xff]   ;;  %v2821_v27 = vld [vmem:[%s4858_s2 + $0x130] ss:$24 sps:$4 sm:$0xff]  }
   0x9   :  { %v3124_v20 = vld [vmem:[%s4859_s0 + $0x60] sm:$0xff]   ;;  %v3157_v29 = vld [vmem:[%s4859_s0 + $0x8] sm:$0xff]   ;;  %v2815_v31 = vld [vmem:[%s4858_s2 + $0xf8] ss:$24 sps:$4 sm:$0xff]  }
   0xa   :  { %v2807_v22 = vld [vmem:[%s4858_s2 + $0x160] ss:$24 sps:$4 sm:$0xff]   ;;  %v2839_v28 = vld [vmem:[%s4858_s2 + $0x104] ss:$24 sps:$4 sm:$0xff]   ;;  %v3162_v30 = vld [vmem:[%s4859_s0 + $0x68] sm:$0xff]  }
   0xb   :  { %483 = vmatpush1.bf16.msra.mxu0 %v2786_v6  ;;  %2771 = vmatpush1.bf16.msra.mxu1 %v2786_v6  ;;  %v2810_v25 = vld [vmem:[%s4858_s2 + $0x128] ss:$24 sps:$4 sm:$0xff]   ;;  %v2820_v32 = vld [vmem:[%s4858_s2 + $0xcc] ss:$24 sps:$4 sm:$0xff]   ;;  %v2828_v36 = vld [vmem:[%s4858_s2 + $0x9c] ss:$24 sps:$4 sm:$0xff]  }
   0xc   :  { %484 = vmatprep.subr.bf16.mxu0 %v2787_v7  ;;  %2764 = vmatprep.subr.bf16.mxu1 %v2787_v7  ;;  %v2837_v33 = vld [vmem:[%s4858_s2 + $0x100] ss:$24 sps:$4 sm:$0xff]   ;;  %v2846_v34 = vld [vmem:[%s4858_s2 + $0xd4] ss:$24 sps:$4 sm:$0xff]   ;;  %v2844_v37 = vld [vmem:[%s4858_s2 + $0xd0] ss:$24 sps:$4 sm:$0xff]  }
   0xd   :  { %v2818_v35 = vld [vmem:[%s4858_s2 + $0xc8] ss:$24 sps:$4 sm:$0xff]   ;;  %v3192_v38 = vld [vmem:[%s4859_s0 + $0x10] sm:$0xff]   ;;  %v2831_v41 = vld [vmem:[%s4858_s2 + $0x6c] ss:$24 sps:$4 sm:$0xff]  }
   0xe   :  { %v3197_v39 = vld [vmem:[%s4859_s0 + $0x70] sm:$0xff]   ;;  %v2851_v42 = vld [vmem:[%s4858_s2 + $0xa4] ss:$24 sps:$4 sm:$0xff]   ;;  %v2849_v43 = vld [vmem:[%s4858_s2 + $0xa0] ss:$24 sps:$4 sm:$0xff]  }
   0xf   :  { %485 = vmatpush1.bf16.msra.mxu0 %v2789_v8  ;;  %2772 = vmatpush1.bf16.msra.mxu1 %v2789_v8  ;;  %v2826_v40 = vld [vmem:[%s4858_s2 + $0x98] ss:$24 sps:$4 sm:$0xff]   ;;  %v2829_v44 = vld [vmem:[%s4858_s2 + $0x68] ss:$24 sps:$4 sm:$0xff]   ;;  %v2855_v45 = vld [vmem:[%s4858_s2 + $0x74] ss:$24 sps:$4 sm:$0xff]  }
  0x10   :  { %486 = vmatprep.subr.bf16.mxu0 %v2790_v9  ;;  %2765 = vmatprep.subr.bf16.mxu1 %v2790_v9  ;;  %v2836_v46 = vld [vmem:[%s4858_s2 + $0x3c] ss:$24 sps:$4 sm:$0xff]   ;;  %v2834_v49 = vld [vmem:[%s4858_s2 + $0x38] ss:$24 sps:$4 sm:$0xff]   ;;  %v2842_v50 = vld [vmem:[%s4858_s2 + $0xc] ss:$24 sps:$4 sm:$0xff]  }
  0x11   :  { %v3227_v47 = vld [vmem:[%s4859_s0 + $0x18] sm:$0xff]   ;;  %v2853_v51 = vld [vmem:[%s4858_s2 + $0x70] ss:$24 sps:$4 sm:$0xff]   ;;  %v3259_v55 = vld [vmem:[%s4859_s0 + $0x20] sm:$0xff]  }
  0x12   :  { %v3232_v48 = vld [vmem:[%s4859_s0 + $0x78] sm:$0xff]   ;;  %v2840_v53 = vld [vmem:[%s4858_s2 + $0x8] ss:$24 sps:$4 sm:$0xff]   ;;  %v2864_v56 = vld [vmem:[%s4858_s2 + $0x14] ss:$24 sps:$4 sm:$0xff]  }
  0x13   :  { %487 = vmatpush1.bf16.msra.mxu0 %v2792_v10  ;;  %2773 = vmatpush1.bf16.msra.mxu1 %v2792_v10  ;;  %v2860_v52 = vld [vmem:[%s4858_s2 + $0x44] ss:$24 sps:$4 sm:$0xff]   ;;  %v2858_v54 = vld [vmem:[%s4858_s2 + $0x40] ss:$24 sps:$4 sm:$0xff]   ;;  %v2862_v57 = vld [vmem:[%s4858_s2 + $0x10] ss:$24 sps:$4 sm:$0xff]  }
  0x14   :  { %488 = vmatprep.subr.bf16.mxu0 %v2793_v11  ;;  %2766 = vmatprep.subr.bf16.mxu1 %v2793_v11  ;;  %v3274_v58 = vld [vmem:[%s4859_s0 + $0x28] sm:$0xff]   ;;  %v3283_v59 = vld [vmem:[%s4859_s0 + $0x30] sm:$0xff]   ;;  %v2866_v60 = vld [vmem:[%s4860_s4 + $0x78] sm:$0xff]  }
  0x15   :  { %v3295_v61 = vld [vmem:[%s4859_s0 + $0x38] sm:$0xff]   ;;  %v3307_v63 = vld [vmem:[%s4859_s0 + $0x40] sm:$0xff]   ;;  %v2868_v0 = vld [vmem:[%s4860_s4 + $0x70] sm:$0xff]  }
  0x16   :  { %v2867_v62 = vld [vmem:[%s4860_s4 + $0x38] sm:$0xff]   ;;  %v2869_v2 = vld [vmem:[%s4860_s4 + $0x30] sm:$0xff]   ;;  %v3322_v3 = vld [vmem:[%s4859_s0 + $0x48] sm:$0xff]  }
  0x17   :  { %489 = vmatpush1.bf16.msra.mxu0 %v2795_v12  ;;  %2774 = vmatpush1.bf16.msra.mxu1 %v2795_v12  ;;  %v3331_v4 = vld [vmem:[%s4859_s0 + $0x50] sm:$0xff]   ;;  %v2870_v5 = vld [vmem:[%s4860_s4 + $0x68] sm:$0xff]   ;;  %v3346_v7 = vld [vmem:[%s4859_s0 + $0x58] sm:$0xff]  }
  0x18   :  { %490 = vmatprep.subr.bf16.mxu0 %v2796_v13  ;;  %2767 = vmatprep.subr.bf16.mxu1 %v2796_v13  ;;  %v2871_v6 = vld [vmem:[%s4860_s4 + $0x28] sm:$0xff]   ;;  %v2872_v8 = vld [vmem:[%s4860_s4 + $0x60] sm:$0xff]   ;;  %v2874_v10 = vld [vmem:[%s4860_s4 + $0x58] sm:$0xff]  }
  0x19   :  { %v2873_v9 = vld [vmem:[%s4860_s4 + $0x20] sm:$0xff]   ;;  %v2875_v11 = vld [vmem:[%s4860_s4 + $0x18] sm:$0xff]   ;;  %v2876_v12 = vld [vmem:[%s4860_s4 + $0x50] sm:$0xff]  }
  0x1a   :  { %v2877_v13 = vld [vmem:[%s4860_s4 + $0x10] sm:$0xff]  }
  0x1b   :  { %491 = vmatpush1.bf16.msra.mxu0 %v2798_v14  ;;  %2775 = vmatpush1.bf16.msra.mxu1 %v2798_v14  ;;  %v2878_v14 = vld [vmem:[%s4860_s4 + $0x48] sm:$0xff]  }
  0x1c   :  { %492 = vmatprep.subr.bf16.mxu0 %v2799_v15  ;;  %2768 = vmatprep.subr.bf16.mxu1 %v2799_v15  ;;  %v2879_v15 = vld [vmem:[%s4860_s4 + $0x8] sm:$0xff]  }
  0x1f   :  { %493 = vmatpush1.bf16.msra.mxu0 %v2801_v16  ;;  %2776 = vmatpush1.bf16.msra.mxu1 %v2801_v16  ;;  %v2880_v16 = vld [vmem:[%s4860_s4 + $0x40] sm:$0xff]  }
  0x20   :  { %671 = vmatprep.subr.bf16.mxu1 %v2806_v17  ;;  %864 = vmatprep.subr.bf16.mxu0 %v2809_v18  ;;  %v2881_v17 = vld [vmem:[%s4860_s4] sm:$0xff]  }
  0x22   :  { %511 = vmatmul.mubr.bf16.vlgmr.msra.gmra.mxu0 %v3119_v19  ;;  %631 = vmatmul.mubr.bf16.vlgmr.msra.gmra.mxu1 %v3124_v20 }
  0x23   :  { %672 = vmatpush1.bf16.msra.mxu1 %v2804_v21  ;;  %865 = vmatpush1.bf16.msra.mxu0 %v2807_v22 }
  0x24   :  { %673 = vmatprep.subr.bf16.mxu1 %v2812_v23  ;;  %520 = vmatprep.mubr.bf16.mxu0 %v3014_v1 }
  0x25   :  { %640 = vmatprep.mubr.bf16.mxu1 %v3014_v1  ;;  %866 = vmatprep.subr.bf16.mxu0 %v2823_v24 }
  0x27   :  { %674 = vmatpush1.bf16.msra.mxu1 %v2810_v25  ;;  %867 = vmatpush1.bf16.msra.mxu0 %v2821_v27 }
  0x28   :  { %675 = vmatprep.subr.bf16.mxu1 %v2817_v26  ;;  %868 = vmatprep.subr.bf16.mxu0 %v2839_v28 }
  0x2a   :  { %521 = vmatmul.mubr.bf16.gmra.mxu0 %v3157_v29  ;;  %641 = vmatmul.mubr.bf16.gmra.mxu1 %v3162_v30 }
  0x2b   :  { %676 = vmatpush1.bf16.msra.mxu1 %v2815_v31  ;;  %530 = vmatprep.mubr.bf16.mxu0 %v3014_v1 }
  0x2c   :  { %677 = vmatprep.subr.bf16.mxu1 %v2820_v32  ;;  %650 = vmatprep.mubr.bf16.mxu1 %v3014_v1 }
  0x2d   :  { %869 = vmatpush1.bf16.msra.mxu0 %v2837_v33 }
  0x2e   :  { %870 = vmatprep.subr.bf16.mxu0 %v2846_v34 }
  0x2f   :  { %678 = vmatpush1.bf16.msra.mxu1 %v2818_v35 }
  0x30   :  { %679 = vmatprep.subr.bf16.mxu1 %v2828_v36 }
  0x31   :  { %871 = vmatpush1.bf16.msra.mxu0 %v2844_v37 }
  0x32   :  { %531 = vmatmul.mubr.bf16.gmra.mxu0 %v3192_v38  ;;  %651 = vmatmul.mubr.bf16.gmra.mxu1 %v3197_v39 }
  0x33   :  { %680 = vmatpush1.bf16.msra.mxu1 %v2826_v40  ;;  %540 = vmatprep.mubr.bf16.mxu0 %v3014_v1 }
  0x34   :  { %681 = vmatprep.subr.bf16.mxu1 %v2831_v41  ;;  %660 = vmatprep.mubr.bf16.mxu1 %v3014_v1 }
  0x35   :  { %872 = vmatprep.subr.bf16.mxu0 %v2851_v42 }
  0x36   :  { %873 = vmatpush1.bf16.msra.mxu0 %v2849_v43 }
  0x37   :  { %682 = vmatpush1.bf16.msra.mxu1 %v2829_v44  ;;  %874 = vmatprep.subr.bf16.mxu0 %v2855_v45 }
  0x38   :  { %683 = vmatprep.subr.bf16.mxu1 %v2836_v46 }
  0x3a   :  { %541 = vmatmul.mubr.bf16.gmra.mxu0 %v3227_v47  ;;  %661 = vmatmul.mubr.bf16.gmra.mxu1 %v3232_v48 }
  0x3b   :  { %684 = vmatpush1.bf16.msra.mxu1 %v2834_v49  ;;  %550 = vmatprep.mubr.bf16.mxu0 %v3014_v1 }
  0x3c   :  { %685 = vmatprep.subr.bf16.mxu1 %v2842_v50  ;;  %703 = vmatprep.mubr.bf16.mxu1 %v3014_v1 }
  0x3d   :  { %875 = vmatpush1.bf16.msra.mxu0 %v2853_v51 }
  0x3e   :  { %876 = vmatprep.subr.bf16.mxu0 %v2860_v52 }
  0x3f   :  { %686 = vmatpush1.bf16.msra.mxu1 %v2840_v53 }
  0x40   :  { %2589 = vmatprep.subr.bf16.mxu1 %v2866_v60 }
  0x41   :  { %877 = vmatpush1.bf16.msra.mxu0 %v2858_v54 }
  0x42   :  { %551 = vmatmul.mubr.bf16.gmra.mxu0 %v3259_v55  ;;  %704 = vmatmul.mubr.bf16.vlgmr.msra.gmra.mxu1 %v3119_v19 }
  0x43   :  { %560 = vmatprep.mubr.bf16.mxu0 %v3014_v1  ;;  %713 = vmatprep.mubr.bf16.mxu1 %v3014_v1 }
  0x44   :  { %878 = vmatprep.subr.bf16.mxu0 %v2864_v56  ;;  %2590 = vmatpush3.bf16.msra.mxu1 %v2867_v62 }
  0x45   :  { %879 = vmatpush1.bf16.msra.mxu0 %v2862_v57  ;;  %2591 = vmatprep.subr.bf16.mxu1 %v2868_v0 }
  0x48   :  { %2592 = vmatpush3.bf16.msra.mxu1 %v2869_v2 }
  0x49   :  { %2593 = vmatprep.subr.bf16.mxu1 %v2870_v5 }
  0x4a   :  { %561 = vmatmul.mubr.bf16.gmra.mxu0 %v3274_v58  ;;  %714 = vmatmul.mubr.bf16.gmra.mxu1 %v3157_v29 }
  0x4b   :  { %570 = vmatprep.mubr.bf16.mxu0 %v3014_v1  ;;  %723 = vmatprep.mubr.bf16.mxu1 %v3014_v1 }
  0x4c   :  { %2594 = vmatpush3.bf16.msra.mxu1 %v2871_v6 }
  0x4d   :  { %2595 = vmatprep.subr.bf16.mxu1 %v2872_v8 }
  0x50   :  { %2596 = vmatpush3.bf16.msra.mxu1 %v2873_v9 }
  0x51   :  { %2597 = vmatprep.subr.bf16.mxu1 %v2874_v10 }
  0x52   :  { %571 = vmatmul.mubr.bf16.gmra.mxu0 %v3283_v59  ;;  %724 = vmatmul.mubr.bf16.gmra.mxu1 %v3192_v38 }
  0x53   :  { %580 = vmatprep.mubr.bf16.mxu0 %v3014_v1  ;;  %733 = vmatprep.mubr.bf16.mxu1 %v3014_v1 }
  0x54   :  { %2598 = vmatpush3.bf16.msra.mxu1 %v2875_v11 }
  0x55   :  { %2599 = vmatprep.subr.bf16.mxu1 %v2876_v12 }
  0x58   :  { %2600 = vmatpush3.bf16.msra.mxu1 %v2877_v13 }
  0x59   :  { %2601 = vmatprep.subr.bf16.mxu1 %v2878_v14 }
  0x5a   :  { %581 = vmatmul.mubr.bf16.gmra.mxu0 %v3295_v61  ;;  %734 = vmatmul.mubr.bf16.gmra.mxu1 %v3227_v47 }
  0x5b   :  { %590 = vmatprep.mubr.bf16.mxu0 %v3014_v1  ;;  %743 = vmatprep.mubr.bf16.mxu1 %v3014_v1 }
  0x5c   :  { %2602 = vmatpush3.bf16.msra.mxu1 %v2879_v15 }
  0x5d   :  { %2603 = vmatprep.subr.bf16.mxu1 %v2880_v16 }
  0x60   :  { %2604 = vmatpush3.bf16.msra.mxu1 %v2881_v17 }
  0x62   :  { %591 = vmatmul.mubr.bf16.gmra.mxu0 %v3307_v63  ;;  %744 = vmatmul.mubr.bf16.gmra.mxu1 %v3259_v55 }
  0x63   :  { %600 = vmatprep.mubr.bf16.mxu0 %v3014_v1  ;;  %753 = vmatprep.mubr.bf16.mxu1 %v3014_v1 }
  0x6a   :  { %601 = vmatmul.mubr.bf16.gmra.mxu0 %v3322_v3  ;;  %754 = vmatmul.mubr.bf16.gmra.mxu1 %v3274_v58 }
  0x6b   :  { %610 = vmatprep.mubr.bf16.mxu0 %v3014_v1  ;;  %763 = vmatprep.mubr.bf16.mxu1 %v3014_v1 }
  0x72   :  { %611 = vmatmul.mubr.bf16.gmra.mxu0 %v3331_v4  ;;  %764 = vmatmul.mubr.bf16.gmra.mxu1 %v3283_v59 }
  0x73   :  { %620 = vmatprep.mubr.bf16.mxu0 %v3014_v1  ;;  %773 = vmatprep.mubr.bf16.mxu1 %v3014_v1 }
  0x7a   :  { %621 = vmatmul.mubr.bf16.gmra.mxu0 %v3346_v7  ;;  %774 = vmatmul.mubr.bf16.gmra.mxu1 %v3295_v61 }
  0x7b   :  { %783 = vmatprep.mubr.bf16.mxu1 %v3014_v1  ;;  %896 = vmatprep.mubr.bf16.mxu0 %v3014_v1 }
  0x82   :  { %784 = vmatmul.mubr.bf16.gmra.mxu1 %v3307_v63  ;;  %897 = vmatmul.mubr.bf16.vlgmr.msra.gmra.mxu0 %v3119_v19 }
  0x83   :  { %793 = vmatprep.mubr.bf16.mxu1 %v3014_v1  ;;  %906 = vmatprep.mubr.bf16.mxu0 %v3014_v1 }
  0x8a   :  { %794 = vmatmul.mubr.bf16.gmra.mxu1 %v3322_v3  ;;  %907 = vmatmul.mubr.bf16.gmra.mxu0 %v3157_v29 }
  0x8b   :  { %803 = vmatprep.mubr.bf16.mxu1 %v3014_v1  ;;  %916 = vmatprep.mubr.bf16.mxu0 %v3014_v1 }
  0x92   :  { %804 = vmatmul.mubr.bf16.gmra.mxu1 %v3331_v4  ;;  %917 = vmatmul.mubr.bf16.gmra.mxu0 %v3192_v38 }
  0x93   :  { %813 = vmatprep.mubr.bf16.mxu1 %v3014_v1  ;;  %926 = vmatprep.mubr.bf16.mxu0 %v3014_v1 }
  0x9a   :  { %814 = vmatmul.mubr.bf16.gmra.mxu1 %v3346_v7  ;;  %927 = vmatmul.mubr.bf16.gmra.mxu0 %v3227_v47 }
  0x9b   :  { %823 = vmatprep.mubr.bf16.mxu1 %v3014_v1  ;;  %936 = vmatprep.mubr.bf16.mxu0 %v3014_v1 }
  0xa2   :  { %824 = vmatmul.mubr.bf16.gmra.mxu1 %v3124_v20  ;;  %937 = vmatmul.mubr.bf16.gmra.mxu0 %v3259_v55 }
  0xa3   :  { %833 = vmatprep.mubr.bf16.mxu1 %v3014_v1  ;;  %946 = vmatprep.mubr.bf16.mxu0 %v3014_v1 }
  0xaa   :  { %834 = vmatmul.mubr.bf16.gmra.mxu1 %v3162_v30  ;;  %947 = vmatmul.mubr.bf16.gmra.mxu0 %v3274_v58 }
  0xab   :  { %843 = vmatprep.mubr.bf16.mxu1 %v3014_v1  ;;  %956 = vmatprep.mubr.bf16.mxu0 %v3014_v1 }
  0xb2   :  { %844 = vmatmul.mubr.bf16.gmra.mxu1 %v3197_v39  ;;  %957 = vmatmul.mubr.bf16.gmra.mxu0 %v3283_v59 }
  0xb3   :  { %853 = vmatprep.mubr.bf16.mxu1 %v3014_v1  ;;  %966 = vmatprep.mubr.bf16.mxu0 %v3014_v1 }
  0xba   :  { %854 = vmatmul.mubr.bf16.gmra.mxu1 %v3232_v48  ;;  %967 = vmatmul.mubr.bf16.gmra.mxu0 %v3295_v61 }
  0xbb   :  { %976 = vmatprep.mubr.bf16.mxu0 %v3014_v1 }
  0xc2   :  { %977 = vmatmul.mubr.bf16.gmra.mxu0 %v3307_v63 }
  0xc3   :  { %986 = vmatprep.mubr.bf16.mxu0 %v3014_v1 }
  0xca   :  { %987 = vmatmul.mubr.bf16.gmra.mxu0 %v3322_v3 }
  0xcb   :  { %996 = vmatprep.mubr.bf16.mxu0 %v3014_v1 }
  0xd2   :  { %997 = vmatmul.mubr.bf16.gmra.mxu0 %v3331_v4 }
  0xd3   :  { %1006 = vmatprep.mubr.bf16.mxu0 %v3014_v1 }
  0xda   :  { %1007 = vmatmul.mubr.bf16.gmra.mxu0 %v3346_v7 }
  0xdb   :  { %1016 = vmatprep.mubr.bf16.mxu0 %v3014_v1 }
  0xe2   :  { %v3421_v18 = vpop.f32.mrf.mxu0  ;;  %v3423_v19 = vpop.f32.mrf.mxu1  ;;  %1017 = vmatmul.mubr.bf16.gmra.mxu0 %v3124_v20 }
  0xe3   :  { %1026 = vmatprep.mubr.bf16.mxu0 %v3014_v1 }
  0xe4   :  { %v3427_v21 = vpop.f32.mrf.mxu0  ;;  %v3429_v22 = vpop.f32.mrf.mxu1 }
  0xe6   :  { %v3431_v23 = vpop.f32.mrf.mxu0  ;;  %v3433_v24 = vpop.f32.mrf.mxu1 }
  0xe8   :  { %v3435_v25 = vpop.f32.mrf.mxu0  ;;  %v3437_v26 = vpop.f32.mrf.mxu1 }
  0xea   :  { %v3439_v27 = vpop.f32.mrf.mxu0  ;;  %v3441_v28 = vpop.f32.mrf.mxu1  ;;  %1027 = vmatmul.mubr.bf16.gmra.mxu0 %v3162_v30 }
  0xeb   :  { %1036 = vmatprep.mubr.bf16.mxu0 %v3014_v1 }
  0xec   :  { %v3445_v20 = vpop.f32.mrf.mxu0  ;;  %v3447_v29 = vpop.f32.mrf.mxu1 }
  0xed   :  { %4872 = vst [vmem:[#allocation2_spill] sm:$0xff] %v3447_v29 }
  0xee   :  { %v3449_v31 = vpop.f32.mrf.mxu0  ;;  %v3451_v32 = vpop.f32.mrf.mxu1 }
  0xef   :  { %4873 = vst [vmem:[#allocation3_spill] sm:$0xff] %v3451_v32 }
  0xf0   :  { %v3453_v33 = vpop.f32.mrf.mxu0  ;;  %v3455_v34 = vpop.f32.mrf.mxu1 }
  0xf1   :  { %4874 = vst [vmem:[#allocation4_spill] sm:$0xff] %v3455_v34  ;;  %v112_v34 = vlaneseq }
  0xf2   :  { %v3457_v35 = vpop.f32.mrf.mxu0  ;;  %v3459_v36 = vpop.f32.mrf.mxu1  ;;  %1037 = vmatmul.mubr.bf16.gmra.mxu0 %v3197_v39 }
  0xf3   :  { %4875 = vst [vmem:[#allocation5_spill] sm:$0xff] %v3459_v36  ;;  %1046 = vmatprep.mubr.bf16.mxu0 %v3014_v1 }
  0xf4   :  { %v3463_v30 = vpop.f32.mrf.mxu0  ;;  %v3465_v37 = vpop.f32.mrf.mxu1 }
  0xf5   :  { %4876 = vst [vmem:[#allocation6_spill] sm:$0xff] %v3465_v37 }
  0xf6   :  { %v3467_v38 = vpop.f32.mrf.mxu0  ;;  %v3469_v40 = vpop.f32.mrf.mxu1 }
  0xf7   :  { %4877 = vst [vmem:[#allocation7_spill] sm:$0xff] %v3469_v40 }
  0xf8   :  { %v3471_v41 = vpop.f32.mrf.mxu0  ;;  %v3473_v42 = vpop.f32.mrf.mxu1 }
  0xf9   :  { %4878 = vst [vmem:[#allocation8_spill] sm:$0xff] %v3473_v42 }
  0xfa   :  { %v3475_v43 = vpop.f32.mrf.mxu0  ;;  %v3477_v44 = vpop.f32.mrf.mxu1  ;;  %1047 = vmatmul.mubr.bf16.gmra.mxu0 %v3232_v48 }
  0xfb   :  { %4879 = vst [vmem:[#allocation9_spill] sm:$0xff] %v3477_v44 }
  0xfc   :  { %v3480_v39 = vpop.f32.mrf.mxu0  ;;  %v3482_v1 = vpop.f32.mrf.mxu1 }
  0xfd   :  { %4880 = vst [vmem:[#allocation10_spill] sm:$0xff] %v3482_v1 }
  0xfe   :  { %v3484_v45 = vpop.f32.mrf.mxu0  ;;  %v3486_v46 = vpop.f32.mrf.mxu1 }
  0xff   :  { %4881 = vst [vmem:[#allocation11_spill] sm:$0xff] %v3486_v46 }
 0x100   :  { %v3488_v47 = vpop.f32.mrf.mxu0  ;;  %v3490_v49 = vpop.f32.mrf.mxu1 }
 0x101   :  { %4882 = vst [vmem:[#allocation12_spill] sm:$0xff] %v3490_v49 }
 0x102   :  { %v3492_v50 = vpop.f32.mrf.mxu0  ;;  %v3494_v51 = vpop.f32.mrf.mxu1 }
 0x104   :  { %v3496_v52 = vpop.f32.mrf.mxu0  ;;  %v3498_v53 = vpop.f32.mrf.mxu1 }
 0x106   :  { %v3500_v48 = vpop.f32.mrf.mxu0  ;;  %v3502_v54 = vpop.f32.mrf.mxu1 }
 0x108   :  { %v3504_v55 = vpop.f32.mrf.mxu0  ;;  %v3506_v56 = vpop.f32.mrf.mxu1 }
 0x10a   :  { %v3508_v57 = vpop.f32.mrf.mxu0  ;;  %v3510_v58 = vpop.f32.mrf.mxu1 }
 0x10c   :  { %v3512_v59 = vpop.f32.mrf.mxu0  ;;  %v3514_v60 = vpop.f32.mrf.mxu1 }
 0x10e   :  { %v3516_v61 = vpop.f32.mrf.mxu0  ;;  %v3518_v62 = vpop.f32.mrf.mxu1 }
 0x110   :  { %v3520_v63 = vpop.f32.mrf.mxu0  ;;  %v3522_v0 = vpop.f32.mrf.mxu1 }
 0x112   :  { %v3524_v2 = vpop.f32.mrf.mxu0  ;;  %v3526_v3 = vpop.f32.mrf.mxu1 }
 0x114   :  { %v3528_v4 = vpop.f32.mrf.mxu0  ;;  %v3530_v5 = vpop.f32.mrf.mxu1 }
 0x116   :  { %v3532_v6 = vpop.f32.mrf.mxu0  ;;  %v3534_v7 = vpop.f32.mrf.mxu1 }
 0x117   :  { %4883 = vst [vmem:[#allocation13_spill] sm:$0xff] %v3532_v6 }
 0x118   :  { %v3536_v8 = vpop.f32.mrf.mxu0  ;;  %v3538_v9 = vpop.f32.mrf.mxu1 }
 0x119   :  { %4884 = vst [vmem:[#allocation14_spill] sm:$0xff] %v3536_v8 }
 0x11a   :  { %v3540_v10 = vpop.f32.mrf.mxu0  ;;  %v3542_v11 = vpop.f32.mrf.mxu1 }
 0x11b   :  { %4885 = vst [vmem:[#allocation15_spill] sm:$0xff] %v3540_v10 }
 0x11c   :  { %v3544_v12 = vpop.f32.mrf.mxu0  ;;  %v3546_v13 = vpop.f32.mrf.mxu1 }
 0x11d   :  { %4886 = vst [vmem:[#allocation16_spill] sm:$0xff] %v3544_v12 }
 0x11e   :  { %v3548_v14 = vpop.f32.mrf.mxu0  ;;  %v3550_v15 = vpop.f32.mrf.mxu1 }
 0x11f   :  { %4887 = vst [vmem:[#allocation17_spill] sm:$0xff] %v3548_v14 }
 0x120   :  { %v3552_v16 = vpop.f32.mrf.mxu0  ;;  %v3554_v17 = vpop.f32.mrf.mxu1 }
 0x121   :  { %4888 = vst [vmem:[#allocation18_spill] sm:$0xff] %v3552_v16 }
 0x122   :  { %v3556_v49 = vpop.f32.mrf.mxu0  ;;  %v3558_v1 = vpop.f32.mrf.mxu1 }
 0x123   :  { %4889 = vst [vmem:[#allocation19_spill] sm:$0xff] %v3556_v49  ;;  %4890 = vst [vmem:[#allocation20_spill] sm:$0xff] %v3558_v1 }
 0x124   :  { %v3560_v46 = vpop.f32.mrf.mxu0  ;;  %v3562_v44 = vpop.f32.mrf.mxu1 }
 0x125   :  { %4891 = vst [vmem:[#allocation21_spill] sm:$0xff] %v3560_v46  ;;  %4892 = vst [vmem:[#allocation22_spill] sm:$0xff] %v3562_v44  ;;  %v113_v46 = vshrl.u32 %v112_v34, 7 }
 0x126   :  { %v3564_v42 = vpop.f32.mrf.mxu0  ;;  %v3566_v40 = vpop.f32.mrf.mxu1 }
 0x127   :  { %4893 = vst [vmem:[#allocation23_spill] sm:$0xff] %v3564_v42  ;;  %4894 = vst [vmem:[#allocation24_spill] sm:$0xff] %v3566_v40  ;;  %v126_v40 = vsub.s32 3, %v113_v46  ;;  %v130_v1 = vsub.s32 4, %v113_v46  ;;  %v134_v8 = vsub.s32 5, %v113_v46 }
 0x128   :  { %v3568_v37 = vpop.f32.mrf.mxu0  ;;  %v3570_v36 = vpop.f32.mrf.mxu1 }
 0x129   :  { %4895 = vst [vmem:[#allocation25_spill] sm:$0xff] %v3568_v37  ;;  %4896 = vst [vmem:[#allocation26_spill] sm:$0xff] %v3570_v36  ;;  %v114_v37 = vsub.s32 0, %v113_v46  ;;  %v118_v36 = vsub.s32 1, %v113_v46 }
 0x12a   :  { %v3572_v32 = vpop.f32.mrf.mxu0  ;;  %v3574_v29 = vpop.f32.mrf.mxu1 }
 0x12b   :  { %4897 = vst [vmem:[#allocation27_spill] sm:$0xff] %v3572_v32  ;;  %4898 = vst [vmem:[#allocation28_spill] sm:$0xff] %v3574_v29 }
 0x12c   :  { %v3576_v49 = vpop.f32.mrf.mxu0  ;;  %v3578_v16 = vpop.f32.mrf.mxu1 }
 0x12d   :  { %4899 = vst [vmem:[#allocation29_spill] sm:$0xff] %v3576_v49  ;;  %4900 = vst [vmem:[#allocation30_spill] sm:$0xff] %v3578_v16  ;;  %v110_v49 = vld [vmem:[%s4861_s3] sm:$0x3f] }
 0x12e   :  { %v3580_v14 = vpop.f32.mrf.mxu0  ;;  %v3582_v12 = vpop.f32.mrf.mxu1  ;;  %v3601_v29 = vrot.slane %v110_v49, %v118_v36 }
 0x12f   :  { %4901 = vst [vmem:[#allocation31_spill] sm:$0xff] %v3580_v14  ;;  %4902 = vst [vmem:[#allocation32_spill] sm:$0xff] %v3582_v12  ;;  %v3599_v14 = vrot.slane %v110_v49, %v114_v37  ;;  %v122_v12 = vsub.s32 2, %v113_v46 }
 0x130   :  { %v3584_v42 = vpop.f32.mrf.mxu0  ;;  %v3586_v10 = vpop.f32.mrf.mxu1  ;;  %v3621_v37 = vadd.f32 %v3427_v21, %v3601_v29  ;;  %v3645_v46 = vadd.f32 %v3445_v20, %v3601_v29 }
 0x131   :  { %4903 = vst [vmem:[#allocation33_spill] sm:$0xff] %v3584_v42  ;;  %4904 = vst [vmem:[#allocation34_spill] sm:$0xff] %v3586_v10  ;;  %v3617_v36 = vadd.f32 %v3423_v19, %v3599_v14  ;;  %v3637_v19 = vadd.f32 %v3435_v25, %v3601_v29  ;;  %v3641_v21 = vadd.f32 %v3439_v27, %v3599_v14 }
 0x132   :  { %v3588_v44 = vpop.f32.mrf.mxu0  ;;  %v3590_v32 = vpop.f32.mrf.mxu1  ;;  %v3657_v25 = vrot.slane %v110_v49, %v126_v40  ;;  %v3661_v27 = vrot.slane %v110_v49, %v134_v8  ;;  %v3679_v8 = vadd.f32 %v3457_v35, %v3599_v14  ;;  %v3696_v35 = vadd.f32 %v3467_v38, %v3599_v14 }
 0x133   :  { %4905 = vst [vmem:[#allocation35_spill] sm:$0xff] %v3588_v44  ;;  %4906 = vst [vmem:[#allocation36_spill] sm:$0xff] %v3590_v32 }
 0x134   :  { %v3595_v16 = vpop.f32.mrf.mxu0  ;;  %v3597_v34 = vpop.f32.mrf.mxu1  ;;  %4913 = vst [vmem:[#allocation43_spill] sm:$0xff] %v3617_v36 }
 0x135   :  { %4907 = vst [vmem:[#allocation37_spill] sm:$0xff] %v3595_v16  ;;  %4908 = vst [vmem:[#allocation38_spill] sm:$0xff] %v3597_v34  ;;  %v3613_v16 = vadd.f32 %v3421_v18, %v3599_v14  ;;  %v3633_v18 = vadd.f32 %v3431_v23, %v3599_v14  ;;  %v3655_v23 = vadd.f32 %v3449_v31, %v3599_v14 }
 0x136   :  { %v3603_v42 = vpop.f32.mrf.mxu0  ;;  %v3605_v10 = vpop.f32.mrf.mxu1  ;;  %v3659_v34 = vrot.slane %v110_v49, %v130_v1 }
 0x137   :  { %4909 = vst [vmem:[#allocation39_spill] sm:$0xff] %v3603_v42  ;;  %4910 = vst [vmem:[#allocation40_spill] sm:$0xff] %v3605_v10  ;;  %v1057_v10 = vmax.f32 %v3613_v16, 0.0  ;;  %v1063_v1 = vmax.f32 %v3633_v18, 0.0 }
 0x138   :  { %v3607_v44 = vpop.f32.mrf.mxu0  ;;  %v3609_v32 = vpop.f32.mrf.mxu1 }
 0x139   :  { %4911 = vst [vmem:[#allocation41_spill] sm:$0xff] %v3607_v44  ;;  %4912 = vst [vmem:[#allocation42_spill] sm:$0xff] %v3609_v32  ;;  %v3629_v32 = vadd.f32 %v3429_v22, %v3601_v29 }
 0x13a   :  { %v3623_v42 = vpop.f32.mrf.mxu0  ;;  %v3625_v44 = vpop.f32.mrf.mxu1 }
 0x13b   :  { %4914 = vst [vmem:[#allocation44_spill] sm:$0xff] %v3623_v42  ;;  %4915 = vst [vmem:[#allocation45_spill] sm:$0xff] %v3625_v44  ;;  %v3647_v42 = vrot.slane %v110_v49, %v122_v12  ;;  %v1058_v12 = vmax.f32 %v3621_v37, 0.0  ;;  %v1064_v49 = vmax.f32 %v3637_v19, 0.0  ;;  %v3700_v37 = vadd.f32 %v3471_v41, %v3601_v29 }
 0x13c   :  { %4916 = vst [vmem:[#allocation46_spill] sm:$0xff] %v3629_v32  ;;  %v3649_v22 = vpop.f32.mrf.mxu0  ;;  %v3651_v44 = vpop.f32.mrf.mxu1  ;;  %v3711_v19 = vadd.f32 %v3480_v39, %v3601_v29  ;;  %v712_v39 = vadd.f32 %v3506_v56, %v3657_v25 }
 0x13d   :  { %4917 = vst [vmem:[#allocation47_spill] sm:$0xff] %v3649_v22  ;;  %4918 = vst [vmem:[#allocation48_spill] sm:$0xff] %v3651_v44  ;;  %v3668_v22 = vadd.f32 %v3453_v33, %v3601_v29  ;;  %v3685_v33 = vadd.f32 %v3463_v30, %v3601_v29  ;;  %v706_v20 = vadd.f32 %v3494_v51, %v3647_v42 }
 0x13e   :  { %v3670_v44 = vpop.f32.mrf.mxu0  ;;  %v3672_v31 = vpop.f32.mrf.mxu1  ;;  %v708_v30 = vadd.f32 %v3498_v53, %v3657_v25  ;;  %v3707_v51 = vadd.f32 %v3475_v43, %v3599_v14  ;;  %4924 = vst [vmem:[#allocation54_spill] sm:$0xff] %v3711_v19  ;;  %v710_v38 = vadd.f32 %v3502_v54, %v3647_v42  ;;  %v3720_v53 = vadd.f32 %v3484_v45, %v3599_v14 }
 0x13f   :  { %4919 = vst [vmem:[#allocation49_spill] sm:$0xff] %v3670_v44  ;;  %4920 = vst [vmem:[#allocation50_spill] sm:$0xff] %v3672_v31  ;;  %v3724_v43 = vadd.f32 %v3488_v47, %v3601_v29  ;;  %v3731_v54 = vadd.f32 %v3492_v50, %v3599_v14  ;;  %v3751_v47 = vadd.f32 %v3500_v48, %v3599_v14 }
 0x140   :  { %v3689_v40 = vpop.f32.mrf.mxu0  ;;  %v3691_v18 = vpop.f32.mrf.mxu1  ;;  %4923 = vst [vmem:[#allocation53_spill] sm:$0xff] %v3707_v51  ;;  %v1060_v56 = vmax.f32 %v708_v30, 0.0  ;;  %v1065_v31 = vmax.f32 %v710_v38, 0.0  ;;  %v720_v48 = vadd.f32 %v3518_v62, %v3647_v42  ;;  %v718_v30 = vadd.f32 %v3514_v60, %v3657_v25 }
 0x141   :  { %4921 = vst [vmem:[#allocation51_spill] sm:$0xff] %v3689_v40  ;;  %4922 = vst [vmem:[#allocation52_spill] sm:$0xff] %v3691_v18  ;;  %v1059_v40 = vmax.f32 %v706_v20, 0.0  ;;  %v3740_v18 = vadd.f32 %v3496_v52, %v3601_v29  ;;  %v1066_v52 = vmax.f32 %v712_v39, 0.0  ;;  %v3780_v60 = vadd.f32 %v3437_v26, %v3601_v29 }
 0x142   :  { %v3715_v32 = vpop.f32.mrf.mxu1  ;;  %v898_v41 = vpop.f32.mrf.mxu0  ;;  %4926 = vst [vmem:[#allocation56_spill] sm:$0xff] %v3724_v43  ;;  %v1250_v19 = vadd.f32 %v1060_v56, %v1058_v12  ;;  %v1251_v6 = vadd.f32 %v1065_v31, %v1063_v1  ;;  %v722_v12 = vadd.f32 %v3522_v0, %v3657_v25  ;;  %v3792_v26 = vadd.f32 %v3504_v55, %v3601_v29 }
 0x143   :  { %4925 = vst [vmem:[#allocation55_spill] sm:$0xff] %v3715_v32  ;;  %v899_v36 = vadd.f32 %v898_v41, %v3659_v34  ;;  %v1249_v16 = vadd.f32 %v1059_v40, %v1057_v10  ;;  %v716_v32 = vadd.f32 %v3510_v58, %v3647_v42  ;;  %v1252_v40 = vadd.f32 %v1066_v52, %v1064_v49 }
 0x144   :  { %v3734_v44 = vpop.f32.mrf.mxu1  ;;  %v900_v45 = vpop.f32.mrf.mxu0  ;;  %v3776_v49 = vadd.f32 %v3433_v24, %v3599_v14  ;;  %v1077_v52 = vmax.f32 %v720_v48, 0.0  ;;  %v3788_v24 = vadd.f32 %v3441_v28, %v3599_v14  ;;  %v3798_v48 = vadd.f32 %v3508_v57, %v3599_v14 }
 0x145   :  { %4927 = vst [vmem:[#allocation57_spill] sm:$0xff] %v3734_v44  ;;  %v901_v20 = vadd.f32 %v900_v45, %v3661_v27  ;;  %v1061_v51 = vmax.f32 %v899_v36, 0.0  ;;  %v1071_v0 = vmax.f32 %v716_v32, 0.0  ;;  %v1072_v32 = vmax.f32 %v718_v30, 0.0 }
 0x146   :  { %v3745_v41 = vpop.f32.mrf.mxu1  ;;  %v902_v44 = vpop.f32.mrf.mxu0  ;;  %v4929_v28 = vmax.f32 %v3641_v21, 0.0  ;;  %v3805_v55 = vadd.f32 %v3512_v59, %v3601_v29  ;;  %v730_v30 = vadd.f32 %v3534_v7, %v3647_v42  ;;  %v4930_v57 = vmax.f32 %v3655_v23, 0.0 }
 0x147   :  { %4928 = vst [vmem:[#allocation58_spill] sm:$0xff] %v3745_v41  ;;  %v903_v38 = vadd.f32 %v902_v44, %v3659_v34  ;;  %v1062_v39 = vmax.f32 %v901_v20, 0.0  ;;  %v1111_v44 = vmax.f32 %v3751_v47, 0.0  ;;  %v1313_v58 = vadd.f32 %v1249_v16, %v1061_v51  ;;  %v2882_v20 = vld [vmem:[%s4862_s6 + $0x18] sm:$0xff]  }
 0x148   :  { %v3755_v50 = vpop.f32.mrf.mxu1  ;;  %v904_v45 = vpop.f32.mrf.mxu0  ;;  %2721 = vmatprep.subr.bf16.mxu0 %v2882_v20  ;;  %v4932_v59 = vmax.f32 %v3668_v22, 0.0  ;;  %v728_v7 = vadd.f32 %v3530_v5, %v3657_v25  ;;  %v1117_v22 = vmax.f32 %v3798_v48, 0.0 }
 0x149   :  { %v1067_v43 = vmax.f32 %v903_v38, 0.0  ;;  %v905_v10 = vadd.f32 %v904_v45, %v3661_v27  ;;  %v1314_v16 = vadd.f32 %v1250_v19, %v1062_v39  ;;  %v2883_v45 = vld [vmem:[%s4862_s6 + $0x10] sm:$0xff]   ;;  %v1078_v19 = vmax.f32 %v722_v12, 0.0  ;;  %2722 = vmatpush3.bf16.msra.mxu0 %v2882_v20 }
 0x14a   :  { %v908_v36 = vpop.f32.mrf.mxu0  ;;  %v3768_v56 = vpop.f32.mrf.mxu1  ;;  %2723 = vmatprep.subr.bf16.mxu0 %v2883_v45 }
 0x14b   :  { %v1315_v41 = vadd.f32 %v1251_v6, %v1067_v43  ;;  %v1068_v62 = vmax.f32 %v905_v10, 0.0  ;;  %v909_v31 = vadd.f32 %v908_v36, %v3659_v34 }
 0x14c   :  { %v910_v1 = vpop.f32.mrf.mxu0 }
 0x14d   :  { %v1377_v6 = vpack.c.bf16 %v1315_v41, %v1313_v58  ;;  %v1316_v51 = vadd.f32 %v1252_v40, %v1068_v62  ;;  %v911_v43 = vadd.f32 %v910_v1, %v3661_v27  ;;  %v3794_v41 = vpop.f32.mrf.mxu1  ;;  %v1073_v39 = vmax.f32 %v909_v31, 0.0  ;;  %2724 = vmatpush3.bf16.msra.mxu0 %v2883_v45 }
 0x14e   :  { %v912_v38 = vpop.f32.mrf.mxu0  ;;  %v1253_v58 = vadd.f32 %v1071_v0, %v4929_v28  ;;  %v1255_v62 = vadd.f32 %v1077_v52, %v4930_v57  ;;  %v726_v31 = vadd.f32 %v3526_v3, %v3647_v42  ;;  %v4931_v0 = vmax.f32 %v3645_v46, 0.0 }
 0x14f   :  { %v913_v10 = vadd.f32 %v912_v38, %v3659_v34  ;;  %v1378_v40 = vpack.c.bf16 %v1316_v51, %v1314_v16  ;;  %v1074_v1 = vmax.f32 %v911_v43, 0.0  ;;  %v1256_v51 = vadd.f32 %v1078_v19, %v4932_v59  ;;  %v3820_v38 = vpop.f32.mrf.mxu1 }
 0x150   :  { %v914_v36 = vpop.f32.mrf.mxu0  ;;  %v1254_v16 = vadd.f32 %v1072_v32, %v4931_v0  ;;  %v732_v3 = vadd.f32 %v3538_v9, %v3657_v25  ;;  %v1317_v52 = vadd.f32 %v1253_v58, %v1073_v39  ;;  %v1112_v32 = vmax.f32 %v3792_v26, 0.0 }
 0x151   :  { %v915_v12 = vadd.f32 %v914_v36, %v3661_v27  ;;  %v1079_v20 = vmax.f32 %v913_v10, 0.0  ;;  %1576 = vmatprep.mubr.bf16.mxu1 %v1378_v40  ;;  %v1089_v19 = vmax.f32 %v730_v30, 0.0  ;;  %v1083_v5 = vmax.f32 %v726_v31, 0.0  ;;  %v3833_v58 = vpop.f32.mrf.mxu1 }
 0x152   :  { %v918_v21 = vpop.f32.mrf.mxu0  ;;  %1577 = vmatmul.mubr.bf16.vlgmr.msra.gmra.mxu1 %v1377_v6  ;;  %v1318_v40 = vadd.f32 %v1254_v16, %v1074_v1  ;;  %v3831_v9 = vadd.f32 %v3516_v61, %v3599_v14  ;;  %v1084_v39 = vmax.f32 %v728_v7, 0.0  ;;  %v3838_v30 = vadd.f32 %v3520_v63, %v3601_v29 }
 0x153   :  { %v1080_v23 = vmax.f32 %v915_v12, 0.0  ;;  %v1319_v43 = vadd.f32 %v1255_v62, %v1079_v20  ;;  %v919_v10 = vadd.f32 %v918_v21, %v3659_v34  ;;  %v1118_v12 = vmax.f32 %v3805_v55, 0.0 }
 0x154   :  { %v920_v46 = vpop.f32.mrf.mxu0  ;;  %v1090_v62 = vmax.f32 %v732_v3, 0.0  ;;  %v4933_v21 = vmax.f32 %v3696_v35, 0.0  ;;  %v736_v61 = vadd.f32 %v3542_v11, %v3647_v42  ;;  %v740_v16 = vadd.f32 %v3550_v15, %v3647_v42 }
 0x155   :  { %v1320_v36 = vadd.f32 %v1256_v51, %v1080_v23  ;;  %v921_v28 = vadd.f32 %v920_v46, %v3661_v27  ;;  %v1379_v45 = vpack.c.bf16 %v1319_v43, %v1317_v52  ;;  %v1085_v31 = vmax.f32 %v919_v10, 0.0  ;;  %v3859_v10 = vpop.f32.mrf.mxu1 }
 0x156   :  { %v922_v6 = vpop.f32.mrf.mxu0  ;;  %v1259_v0 = vadd.f32 %v1089_v19, %v4933_v21  ;;  %v3848_v51 = vadd.f32 %v3524_v2, %v3599_v14  ;;  %v4934_v63 = vmax.f32 %v3679_v8, 0.0  ;;  %v4935_v52 = vmax.f32 %v3685_v33, 0.0 }
 0x157   :  { %v923_v57 = vadd.f32 %v922_v6, %v3659_v34  ;;  %v1380_v20 = vpack.c.bf16 %v1320_v36, %v1318_v40  ;;  %v1086_v23 = vmax.f32 %v921_v28, 0.0  ;;  %v738_v11 = vadd.f32 %v3546_v13, %v3657_v25  ;;  %v3872_v21 = vpop.f32.mrf.mxu1 }
 0x158   :  { %v924_v1 = vpop.f32.mrf.mxu0  ;;  %v1257_v7 = vadd.f32 %v1083_v5, %v4934_v63  ;;  %v1258_v43 = vadd.f32 %v1084_v39, %v4935_v52  ;;  %v742_v15 = vadd.f32 %v3554_v17, %v3657_v25  ;;  %v4936_v8 = vmax.f32 %v3700_v37, 0.0 }
 0x159   :  { %v1091_v59 = vmax.f32 %v923_v57, 0.0  ;;  %v925_v3 = vadd.f32 %v924_v1, %v3661_v27  ;;  %1584 = vmatprep.mubr.bf16.mxu1 %v1380_v20  ;;  %v1123_v33 = vmax.f32 %v3831_v9, 0.0  ;;  %v1124_v28 = vmax.f32 %v3838_v30, 0.0 }
 0x15a   :  { %v928_v35 = vpop.f32.mrf.mxu0  ;;  %1585 = vmatmul.mubr.bf16.gmra.mxu1 %v1379_v45  ;;  %v1260_v46 = vadd.f32 %v1090_v62, %v4936_v8  ;;  %v1321_v19 = vadd.f32 %v1257_v7, %v1085_v31  ;;  %v1095_v13 = vmax.f32 %v736_v61, 0.0  ;;  %v1101_v6 = vmax.f32 %v740_v16, 0.0 }
 0x15b   :  { %v1323_v2 = vadd.f32 %v1259_v0, %v1091_v59  ;;  %v1092_v36 = vmax.f32 %v925_v3, 0.0  ;;  %v929_v5 = vadd.f32 %v928_v35, %v3659_v34  ;;  %v1322_v39 = vadd.f32 %v1258_v43, %v1086_v23  ;;  %v4937_v0 = vld [vmem:[#allocation13_spill] sm:$0xff]  ;;  %v4938_v23 = vld [vmem:[#allocation14_spill] sm:$0xff]  ;;  %v4941_v43 = vld [vmem:[#allocation20_spill] sm:$0xff] }
 0x15c   :  { %v930_v40 = vpop.f32.mrf.mxu0  ;;  %v1129_v37 = vmax.f32 %v3848_v51, 0.0  ;;  %v3870_v62 = vadd.f32 %v3528_v4, %v3601_v29  ;;  %v1096_v31 = vmax.f32 %v738_v11, 0.0  ;;  %v1102_v20 = vmax.f32 %v742_v15, 0.0  ;;  %v4939_v35 = vld [vmem:[#allocation53_spill] sm:$0xff]  ;;  %v4942_v15 = vld [vmem:[#allocation24_spill] sm:$0xff] }
 0x15d   :  { %v1324_v17 = vadd.f32 %v1260_v46, %v1092_v36  ;;  %v931_v57 = vadd.f32 %v930_v40, %v3661_v27  ;;  %v1381_v45 = vpack.c.bf16 %v1323_v2, %v1321_v19  ;;  %v3876_v61 = vadd.f32 %v4937_v0, %v3599_v14  ;;  %v4946_v0 = vld [vmem:[#allocation56_spill] sm:$0xff] }
 0x15e   :  { %v932_v1 = vpop.f32.mrf.mxu0  ;;  %v1097_v16 = vmax.f32 %v929_v5, 0.0  ;;  %v3881_v3 = vadd.f32 %v4938_v23, %v3601_v29  ;;  %v4940_v4 = vmax.f32 %v4939_v35, 0.0  ;;  %v746_v11 = vadd.f32 %v4941_v43, %v3647_v42  ;;  %v4948_v35 = vld [vmem:[#allocation22_spill] sm:$0xff] }
 0x15f   :  { %v933_v59 = vadd.f32 %v932_v1, %v3659_v34  ;;  %v1382_v7 = vpack.c.bf16 %v1324_v17, %v1322_v39  ;;  %v750_v2 = vadd.f32 %v4942_v15, %v3647_v42  ;;  %v4943_v8 = vmax.f32 %v3720_v53, 0.0  ;;  %v4944_v39 = vld [vmem:[#allocation54_spill] sm:$0xff]  ;;  %v3900_v53 = vpop.f32.mrf.mxu1 }
 0x160   :  { %v934_v63 = vpop.f32.mrf.mxu0  ;;  %v1261_v52 = vadd.f32 %v1095_v13, %v4940_v4  ;;  %v1098_v19 = vmax.f32 %v931_v57, 0.0  ;;  %v4945_v17 = vmax.f32 %v4944_v39, 0.0  ;;  %v4947_v13 = vmax.f32 %v4946_v0, 0.0  ;;  %v4949_v43 = vld [vmem:[#allocation26_spill] sm:$0xff] }
 0x161   :  { %v1263_v46 = vadd.f32 %v1101_v6, %v4943_v8  ;;  %v1103_v36 = vmax.f32 %v933_v59, 0.0  ;;  %v935_v5 = vadd.f32 %v934_v63, %v3661_v27  ;;  %1592 = vmatprep.mubr.bf16.mxu1 %v1382_v7  ;;  %v748_v4 = vadd.f32 %v4948_v35, %v3657_v25 }
 0x162   :  { %v938_v40 = vpop.f32.mrf.mxu0  ;;  %v1262_v1 = vadd.f32 %v1096_v31, %v4945_v17  ;;  %v1264_v23 = vadd.f32 %v1102_v20, %v4947_v13  ;;  %v752_v15 = vadd.f32 %v4949_v43, %v3657_v25  ;;  %1593 = vmatmul.mubr.bf16.gmra.mxu1 %v1381_v45  ;;  %v1325_v6 = vadd.f32 %v1261_v52, %v1097_v16  ;;  %v4950_v16 = vld [vmem:[#allocation15_spill] sm:$0xff] }
 0x163   :  { %v1327_v57 = vadd.f32 %v1263_v46, %v1103_v36  ;;  %v1104_v59 = vmax.f32 %v935_v5, 0.0  ;;  %v939_v63 = vadd.f32 %v938_v40, %v3659_v34  ;;  %v1135_v8 = vmax.f32 %v3876_v61, 0.0  ;;  %v3911_v5 = vpop.f32.mrf.mxu1  ;;  %v4951_v40 = vld [vmem:[#allocation16_spill] sm:$0xff] }
 0x164   :  { %v940_v7 = vpop.f32.mrf.mxu0  ;;  %v1107_v20 = vmax.f32 %v746_v11, 0.0  ;;  %v1113_v39 = vmax.f32 %v750_v2, 0.0  ;;  %v1326_v17 = vadd.f32 %v1262_v1, %v1098_v19  ;;  %v3909_v52 = vadd.f32 %v4950_v16, %v3599_v14 }
 0x165   :  { %v1328_v0 = vadd.f32 %v1264_v23, %v1104_v59  ;;  %v941_v13 = vadd.f32 %v940_v7, %v3661_v27  ;;  %v1383_v43 = vpack.c.bf16 %v1327_v57, %v1325_v6  ;;  %v1108_v46 = vmax.f32 %v748_v4, 0.0  ;;  %v4952_v6 = vld [vmem:[#allocation17_spill] sm:$0xff]  ;;  %v4954_v4 = vld [vmem:[#allocation32_spill] sm:$0xff] }
 0x166   :  { %v942_v35 = vpop.f32.mrf.mxu0  ;;  %v1114_v36 = vmax.f32 %v752_v15, 0.0  ;;  %v3915_v11 = vadd.f32 %v4951_v40, %v3601_v29  ;;  %v1109_v2 = vmax.f32 %v939_v63, 0.0  ;;  %v3920_v57 = vadd.f32 %v4952_v6, %v3599_v14  ;;  %v4955_v63 = vld [vmem:[#allocation28_spill] sm:$0xff] }
 0x167   :  { %v943_v19 = vadd.f32 %v942_v35, %v3659_v34  ;;  %v1384_v23 = vpack.c.bf16 %v1328_v0, %v1326_v17  ;;  %v4953_v59 = vmax.f32 %v3731_v54, 0.0  ;;  %v760_v15 = vadd.f32 %v4954_v4, %v3647_v42 }
 0x168   :  { %v944_v1 = vpop.f32.mrf.mxu0  ;;  %v1267_v40 = vadd.f32 %v1113_v39, %v1111_v44  ;;  %v756_v35 = vadd.f32 %v4955_v63, %v3647_v42  ;;  %v1110_v45 = vmax.f32 %v941_v13, 0.0  ;;  %v4956_v6 = vmax.f32 %v3740_v18, 0.0  ;;  %v4958_v44 = vld [vmem:[#allocation34_spill] sm:$0xff] }
 0x169   :  { %v1265_v7 = vadd.f32 %v1107_v20, %v4953_v59  ;;  %v945_v16 = vadd.f32 %v944_v1, %v3661_v27  ;;  %v1115_v17 = vmax.f32 %v943_v19, 0.0  ;;  %1600 = vmatprep.mubr.bf16.mxu1 %v1384_v23  ;;  %v1268_v54 = vadd.f32 %v1114_v36, %v1112_v32  ;;  %v4957_v20 = vld [vmem:[#allocation30_spill] sm:$0xff]  ;;  %v3937_v1 = vpop.f32.mrf.mxu1 }
 0x16a   :  { %v948_v0 = vpop.f32.mrf.mxu0  ;;  %v1266_v31 = vadd.f32 %v1108_v46, %v4956_v6  ;;  %v758_v59 = vadd.f32 %v4957_v20, %v3657_v25  ;;  %1601 = vmatmul.mubr.bf16.gmra.mxu1 %v1383_v43  ;;  %v762_v39 = vadd.f32 %v4958_v44, %v3657_v25  ;;  %v1141_v18 = vmax.f32 %v3909_v52, 0.0 }
 0x16b   :  { %v1116_v47 = vmax.f32 %v945_v16, 0.0  ;;  %v1329_v13 = vadd.f32 %v1265_v7, %v1109_v2  ;;  %v1331_v19 = vadd.f32 %v1267_v40, %v1115_v17  ;;  %v949_v23 = vadd.f32 %v948_v0, %v3659_v34  ;;  %v4959_v2 = vld [vmem:[#allocation18_spill] sm:$0xff]  ;;  %v3950_v17 = vpop.f32.mrf.mxu1 }
 0x16c   :  { %v950_v4 = vpop.f32.mrf.mxu0  ;;  %v1125_v32 = vmax.f32 %v760_v15, 0.0  ;;  %v1119_v36 = vmax.f32 %v756_v35, 0.0  ;;  %v1330_v63 = vadd.f32 %v1266_v31, %v1110_v45  ;;  %v1147_v20 = vmax.f32 %v3920_v57, 0.0  ;;  %v4960_v15 = vld [vmem:[#allocation19_spill] sm:$0xff] }
 0x16d   :  { %v1332_v46 = vadd.f32 %v1268_v54, %v1116_v47  ;;  %v951_v6 = vadd.f32 %v950_v4, %v3661_v27  ;;  %v1385_v43 = vpack.c.bf16 %v1331_v19, %v1329_v13  ;;  %v3948_v7 = vadd.f32 %v4959_v2, %v3601_v29  ;;  %v4961_v13 = vld [vmem:[#allocation36_spill] sm:$0xff] }
 0x16e   :  { %v952_v16 = vpop.f32.mrf.mxu0  ;;  %v1120_v40 = vmax.f32 %v758_v59, 0.0  ;;  %v3955_v54 = vadd.f32 %v4960_v15, %v3599_v14  ;;  %v1126_v31 = vmax.f32 %v762_v39, 0.0  ;;  %v1121_v45 = vmax.f32 %v949_v23, 0.0  ;;  %v4962_v59 = vld [vmem:[#allocation40_spill] sm:$0xff] }
 0x16f   :  { %v953_v0 = vadd.f32 %v952_v16, %v3659_v34  ;;  %v1386_v47 = vpack.c.bf16 %v1332_v46, %v1330_v63  ;;  %v1271_v44 = vadd.f32 %v1125_v32, %v1123_v33  ;;  %v766_v19 = vadd.f32 %v4961_v13, %v3647_v42  ;;  %v4963_v16 = vld [vmem:[#allocation21_spill] sm:$0xff]  ;;  %v4964_v32 = vld [vmem:[#allocation38_spill] sm:$0xff]  ;;  %v3976_v13 = vpop.f32.mrf.mxu1 }
 0x170   :  { %v954_v35 = vpop.f32.mrf.mxu0  ;;  %v770_v4 = vadd.f32 %v4962_v59, %v3647_v42  ;;  %v3965_v26 = vadd.f32 %v4963_v16, %v3601_v29  ;;  %v1269_v39 = vadd.f32 %v1119_v36, %v1117_v22  ;;  %v1122_v23 = vmax.f32 %v951_v6, 0.0 }
 0x171   :  { %v1127_v2 = vmax.f32 %v953_v0, 0.0  ;;  %v955_v46 = vadd.f32 %v954_v35, %v3661_v27  ;;  %1608 = vmatprep.mubr.bf16.mxu1 %v1386_v47  ;;  %v1270_v33 = vadd.f32 %v1120_v40, %v1118_v12  ;;  %v768_v63 = vadd.f32 %v4964_v32, %v3657_v25  ;;  %v4965_v0 = vld [vmem:[#allocation42_spill] sm:$0xff] }
 0x172   :  { %v958_v9 = vpop.f32.mrf.mxu0  ;;  %v772_v15 = vadd.f32 %v4965_v0, %v3657_v25  ;;  %1609 = vmatmul.mubr.bf16.gmra.mxu1 %v1385_v43  ;;  %v1272_v48 = vadd.f32 %v1126_v31, %v1124_v28  ;;  %v1333_v22 = vadd.f32 %v1269_v39, %v1121_v45  ;;  %v1148_v55 = vmax.f32 %v3948_v7, 0.0  ;;  %v4966_v28 = vld [vmem:[#allocation23_spill] sm:$0xff]  ;;  %v3989_v39 = vpop.f32.mrf.mxu1 }
 0x173   :  { %v1335_v59 = vadd.f32 %v1271_v44, %v1127_v2  ;;  %v1128_v36 = vmax.f32 %v955_v46, 0.0  ;;  %v959_v6 = vadd.f32 %v958_v9, %v3659_v34  ;;  %v1153_v12 = vmax.f32 %v3955_v54, 0.0  ;;  %v4967_v46 = vld [vmem:[#allocation25_spill] sm:$0xff]  ;;  %v4980_v7 = vld [vmem:[#allocation31_spill] sm:$0xff] }
 0x174   :  { %v960_v35 = vpop.f32.mrf.mxu0  ;;  %v1131_v40 = vmax.f32 %v766_v19, 0.0  ;;  %v1137_v47 = vmax.f32 %v770_v4, 0.0  ;;  %v1334_v16 = vadd.f32 %v1270_v33, %v1122_v23  ;;  %v3987_v31 = vadd.f32 %v4966_v28, %v3599_v14  ;;  %v4017_v61 = vpop.f32.mrf.mxu1 }
 0x175   :  { %v1336_v32 = vadd.f32 %v1272_v48, %v1128_v36  ;;  %v961_v0 = vadd.f32 %v960_v35, %v3661_v27  ;;  %v1387_v43 = vpack.c.bf16 %v1335_v59, %v1333_v22  ;;  %v1132_v45 = vmax.f32 %v768_v63, 0.0  ;;  %v4968_v59 = vld [vmem:[#allocation27_spill] sm:$0xff]  ;;  %v4969_v63 = vld [vmem:[#allocation45_spill] sm:$0xff]  ;;  %v4970_v36 = vld [vmem:[#allocation50_spill] sm:$0xff] }
 0x176   :  { %v962_v44 = vpop.f32.mrf.mxu0  ;;  %v1138_v2 = vmax.f32 %v772_v15, 0.0  ;;  %v3993_v19 = vadd.f32 %v4967_v46, %v3601_v29  ;;  %v1133_v4 = vmax.f32 %v959_v6, 0.0  ;;  %v3998_v48 = vadd.f32 %v4968_v59, %v3599_v14 }
 0x177   :  { %v963_v23 = vadd.f32 %v962_v44, %v3659_v34  ;;  %v1388_v33 = vpack.c.bf16 %v1336_v32, %v1334_v16  ;;  %v1273_v22 = vadd.f32 %v1131_v40, %v1129_v37  ;;  %v776_v15 = vadd.f32 %v4969_v63, %v3647_v42  ;;  %v4973_v40 = vld [vmem:[#allocation48_spill] sm:$0xff] }
 0x178   :  { %v964_v9 = vpop.f32.mrf.mxu0  ;;  %v780_v35 = vadd.f32 %v4970_v36, %v3647_v42  ;;  %v1275_v6 = vadd.f32 %v1137_v47, %v1135_v8  ;;  %v1134_v28 = vmax.f32 %v961_v0, 0.0  ;;  %v4971_v46 = vmax.f32 %v3870_v62, 0.0  ;;  %v4974_v36 = vld [vmem:[#allocation52_spill] sm:$0xff] }
 0x179   :  { %v1139_v44 = vmax.f32 %v963_v23, 0.0  ;;  %v965_v16 = vadd.f32 %v964_v9, %v3661_v27  ;;  %1616 = vmatprep.mubr.bf16.mxu1 %v1388_v33  ;;  %v4972_v51 = vmax.f32 %v3881_v3, 0.0  ;;  %v778_v63 = vadd.f32 %v4973_v40, %v3657_v25 }
 0x17a   :  { %v968_v32 = vpop.f32.mrf.mxu0  ;;  %v1274_v59 = vadd.f32 %v1132_v45, %v4971_v46  ;;  %v782_v30 = vadd.f32 %v4974_v36, %v3657_v25  ;;  %1617 = vmatmul.mubr.bf16.gmra.mxu1 %v1387_v43  ;;  %v1337_v8 = vadd.f32 %v1273_v22, %v1133_v4  ;;  %v1159_v62 = vmax.f32 %v3987_v31, 0.0  ;;  %v4975_v4 = vld [vmem:[#allocation29_spill] sm:$0xff]  ;;  %v4976_v31 = vld [vmem:[#allocation55_spill] sm:$0xff] }
 0x17b   :  { %v1276_v37 = vadd.f32 %v1138_v2, %v4972_v51  ;;  %v1339_v47 = vadd.f32 %v1275_v6, %v1139_v44  ;;  %v1140_v0 = vmax.f32 %v965_v16, 0.0  ;;  %v969_v23 = vadd.f32 %v968_v32, %v3659_v34  ;;  %v4028_v16 = vpop.f32.mrf.mxu1 }
 0x17c   :  { %v970_v9 = vpop.f32.mrf.mxu0  ;;  %v1160_v3 = vmax.f32 %v3993_v19, 0.0  ;;  %v1143_v45 = vmax.f32 %v776_v15, 0.0  ;;  %v1149_v2 = vmax.f32 %v780_v35, 0.0  ;;  %v1338_v33 = vadd.f32 %v1274_v59, %v1134_v28 }
 0x17d   :  { %v1340_v46 = vadd.f32 %v1276_v37, %v1140_v0  ;;  %v971_v51 = vadd.f32 %v970_v9, %v3661_v27  ;;  %v1389_v36 = vpack.c.bf16 %v1339_v47, %v1337_v8  ;;  %v1165_v43 = vmax.f32 %v3998_v48, 0.0  ;;  %v4977_v8 = vld [vmem:[#allocation58_spill] sm:$0xff]  ;;  %v4978_v9 = vld [vmem:[#allocation57_spill] sm:$0xff] }
 0x17e   :  { %v972_v40 = vpop.f32.mrf.mxu0  ;;  %v4026_v22 = vadd.f32 %v4975_v4, %v3601_v29  ;;  %v1144_v6 = vmax.f32 %v778_v63, 0.0  ;;  %v1150_v44 = vmax.f32 %v782_v30, 0.0  ;;  %v786_v15 = vadd.f32 %v4976_v31, %v3647_v42 }
 0x17f   :  { %v1145_v35 = vmax.f32 %v969_v23, 0.0  ;;  %v973_v28 = vadd.f32 %v972_v40, %v3659_v34  ;;  %v1390_v59 = vpack.c.bf16 %v1340_v46, %v1338_v33  ;;  %v1277_v37 = vadd.f32 %v1143_v45, %v1141_v18  ;;  %v4048_v46 = vpop.f32.mrf.mxu1 }
 0x180   :  { %v974_v32 = vpop.f32.mrf.mxu0  ;;  %v790_v47 = vadd.f32 %v4977_v8, %v3647_v42  ;;  %v1146_v0 = vmax.f32 %v971_v51, 0.0  ;;  %v1279_v30 = vadd.f32 %v1149_v2, %v1147_v20  ;;  %v788_v4 = vadd.f32 %v4978_v9, %v3657_v25 }
 0x181   :  { %v975_v63 = vadd.f32 %v974_v32, %v3661_v27  ;;  %v792_v23 = vadd.f32 %v3755_v50, %v3657_v25  ;;  %v1151_v40 = vmax.f32 %v973_v28, 0.0  ;;  %1624 = vmatprep.mubr.bf16.mxu1 %v1390_v59  ;;  %v4979_v52 = vmax.f32 %v3915_v11, 0.0 }
 0x182   :  { %v978_v33 = vpop.f32.mrf.mxu0  ;;  %v1280_v45 = vadd.f32 %v1150_v44, %v1148_v55  ;;  %1625 = vmatmul.mubr.bf16.gmra.mxu1 %v1389_v36  ;;  %v1166_v20 = vmax.f32 %v4026_v22, 0.0  ;;  %v1155_v2 = vmax.f32 %v786_v15, 0.0  ;;  %v1341_v31 = vadd.f32 %v1277_v37, %v1145_v35  ;;  %v4981_v36 = vld [vmem:[#allocation33_spill] sm:$0xff] }
 0x183   :  { %v1278_v18 = vadd.f32 %v1144_v6, %v4979_v52  ;;  %v1152_v51 = vmax.f32 %v975_v63, 0.0  ;;  %v979_v57 = vadd.f32 %v978_v33, %v3659_v34  ;;  %v1343_v50 = vadd.f32 %v1279_v30, %v1151_v40  ;;  %v4057_v52 = vpop.f32.mrf.mxu1 }
 0x184   :  { %v980_v28 = vpop.f32.mrf.mxu0  ;;  %v1161_v32 = vmax.f32 %v790_v47, 0.0  ;;  %v607_v55 = vadd.f32 %v4980_v7, %v3599_v14  ;;  %v1156_v6 = vmax.f32 %v788_v4, 0.0  ;;  %v1162_v44 = vmax.f32 %v792_v23, 0.0  ;;  %v4982_v47 = vld [vmem:[#allocation35_spill] sm:$0xff] }
 0x185   :  { %v1342_v59 = vadd.f32 %v1278_v18, %v1146_v0  ;;  %v1344_v8 = vadd.f32 %v1280_v45, %v1152_v51  ;;  %v981_v11 = vadd.f32 %v980_v28, %v3661_v27  ;;  %v1391_v9 = vpack.c.bf16 %v1343_v50, %v1341_v31 }
 0x186   :  { %v982_v63 = vpop.f32.mrf.mxu0  ;;  %v609_v33 = vadd.f32 %v4981_v36, %v3601_v29  ;;  %v1157_v15 = vmax.f32 %v979_v57, 0.0  ;;  %v4062_v0 = vadd.f32 %v4982_v47, %v3599_v14  ;;  %v1281_v30 = vadd.f32 %v1155_v2, %v1153_v12  ;;  %v4079_v2 = vpop.f32.mrf.mxu1 }
 0x187   :  { %v983_v35 = vadd.f32 %v982_v63, %v3659_v34  ;;  %v1392_v37 = vpack.c.bf16 %v1344_v8, %v1342_v59  ;;  %v796_v4 = vadd.f32 %v3768_v56, %v3647_v42  ;;  %v800_v23 = vadd.f32 %v3820_v38, %v3647_v42  ;;  %v4984_v63 = vld [vmem:[#allocation37_spill] sm:$0xff] }
 0x188   :  { %v984_v40 = vpop.f32.mrf.mxu0  ;;  %v1283_v18 = vadd.f32 %v1161_v32, %v1159_v62  ;;  %v1158_v45 = vmax.f32 %v981_v11, 0.0  ;;  %v4983_v31 = vmax.f32 %v3965_v26, 0.0  ;;  %v1284_v54 = vadd.f32 %v1162_v44, %v1160_v3 }
 0x189   :  { %v1163_v51 = vmax.f32 %v983_v35, 0.0  ;;  %v985_v57 = vadd.f32 %v984_v40, %v3661_v27  ;;  %1632 = vmatprep.mubr.bf16.mxu1 %v1392_v37  ;;  %v798_v12 = vadd.f32 %v3794_v41, %v3657_v25  ;;  %v802_v56 = vadd.f32 %v3833_v58, %v3657_v25 }
 0x18a   :  { %v1282_v50 = vadd.f32 %v1156_v6, %v4983_v31  ;;  %v988_v38 = vpop.f32.mrf.mxu0  ;;  %v1345_v62 = vadd.f32 %v1281_v30, %v1157_v15  ;;  %1633 = vmatmul.mubr.bf16.gmra.mxu1 %v1391_v9  ;;  %v1171_v26 = vmax.f32 %v607_v55, 0.0  ;;  %v1172_v8 = vmax.f32 %v609_v33, 0.0  ;;  %v4985_v9 = vld [vmem:[#allocation39_spill] sm:$0xff]  ;;  %v4088_v33 = vpop.f32.mrf.mxu1 }
 0x18b   :  { %v1347_v28 = vadd.f32 %v1283_v18, %v1163_v51  ;;  %v1164_v32 = vmax.f32 %v985_v57, 0.0  ;;  %v989_v59 = vadd.f32 %v988_v38, %v3659_v34  ;;  %v1167_v11 = vmax.f32 %v796_v4, 0.0 }
 0x18c   :  { %v1173_v19 = vmax.f32 %v800_v23, 0.0  ;;  %v990_v3 = vpop.f32.mrf.mxu0  ;;  %v1346_v7 = vadd.f32 %v1282_v50, %v1158_v45  ;;  %v1177_v58 = vmax.f32 %v4062_v0, 0.0  ;;  %v615_v36 = vadd.f32 %v4984_v63, %v3601_v29  ;;  %v4986_v23 = vld [vmem:[#allocation41_spill] sm:$0xff]  ;;  %v4106_v38 = vpop.f32.mrf.mxu1 }
 0x18d   :  { %v1393_v6 = vpack.c.bf16 %v1347_v28, %v1345_v62  ;;  %v1348_v41 = vadd.f32 %v1284_v54, %v1164_v32  ;;  %v991_v44 = vadd.f32 %v990_v3, %v3661_v27  ;;  %v1168_v15 = vmax.f32 %v798_v12, 0.0 }
 0x18e   :  { %v1174_v35 = vmax.f32 %v802_v56, 0.0  ;;  %v992_v37 = vpop.f32.mrf.mxu0  ;;  %v617_v55 = vadd.f32 %v4985_v9, %v3599_v14  ;;  %v1169_v47 = vmax.f32 %v989_v59, 0.0  ;;  %v619_v40 = vadd.f32 %v4986_v23, %v3601_v29 }
 0x18f   :  { %v993_v30 = vadd.f32 %v992_v37, %v3659_v34  ;;  %v1394_v4 = vpack.c.bf16 %v1348_v41, %v1346_v7  ;;  %v1285_v0 = vadd.f32 %v1167_v11, %v1165_v43  ;;  %v806_v18 = vadd.f32 %v3859_v10, %v3647_v42  ;;  %v4987_v7 = vld [vmem:[#allocation44_spill] sm:$0xff] }
 0x190   :  { %v810_v45 = vadd.f32 %v3900_v53, %v3647_v42  ;;  %v994_v51 = vpop.f32.mrf.mxu0  ;;  %v1287_v57 = vadd.f32 %v1173_v19, %v1171_v26  ;;  %v1170_v31 = vmax.f32 %v991_v44, 0.0  ;;  %v1286_v12 = vadd.f32 %v1168_v15, %v1166_v20 }
 0x191   :  { %v1175_v50 = vmax.f32 %v993_v30, 0.0  ;;  %v995_v54 = vadd.f32 %v994_v51, %v3661_v27  ;;  %1640 = vmatprep.mubr.bf16.mxu1 %v1394_v4  ;;  %v1288_v56 = vadd.f32 %v1174_v35, %v1172_v8  ;;  %v808_v48 = vadd.f32 %v3872_v21, %v3657_v25  ;;  %v4988_v35 = vld [vmem:[#allocation47_spill] sm:$0xff] }
 0x192   :  { %v812_v10 = vadd.f32 %v3911_v5, %v3657_v25  ;;  %v998_v43 = vpop.f32.mrf.mxu0  ;;  %v1349_v53 = vadd.f32 %v1285_v0, %v1169_v47  ;;  %1641 = vmatmul.mubr.bf16.gmra.mxu1 %v1393_v6  ;;  %v1178_v59 = vmax.f32 %v615_v36, 0.0  ;;  %v1183_v26 = vmax.f32 %v617_v55, 0.0  ;;  %v4114_v36 = vpop.f32.mrf.mxu1  ;;  %v4989_v47 = vld [vmem:[#allocation49_spill] sm:$0xff] }
 0x193   :  { %v1351_v62 = vadd.f32 %v1287_v57, %v1175_v50  ;;  %v1176_v28 = vmax.f32 %v995_v54, 0.0  ;;  %v999_v32 = vadd.f32 %v998_v43, %v3659_v34  ;;  %v1179_v22 = vmax.f32 %v806_v18, 0.0  ;;  %v4990_v43 = vld [vmem:[#allocation2_spill] sm:$0xff] }
 0x194   :  { %v1185_v20 = vmax.f32 %v810_v45, 0.0  ;;  %v1000_v8 = vpop.f32.mrf.mxu0  ;;  %v1350_v11 = vadd.f32 %v1286_v12, %v1170_v31  ;;  %v1184_v5 = vmax.f32 %v619_v40, 0.0  ;;  %v623_v41 = vadd.f32 %v4987_v7, %v3599_v14 }
 0x195   :  { %v1395_v19 = vpack.c.bf16 %v1351_v62, %v1349_v53  ;;  %v1352_v21 = vadd.f32 %v1288_v56, %v1176_v28  ;;  %v1001_v3 = vadd.f32 %v1000_v8, %v3661_v27  ;;  %v1180_v44 = vmax.f32 %v808_v48, 0.0  ;;  %v4991_v62 = vld [vmem:[#allocation51_spill] sm:$0xff] }
 0x196   :  { %v1186_v63 = vmax.f32 %v812_v10, 0.0  ;;  %v1002_v15 = vpop.f32.mrf.mxu0  ;;  %v625_v6 = vadd.f32 %v4988_v35, %v3601_v29  ;;  %v1181_v37 = vmax.f32 %v999_v32, 0.0  ;;  %v627_v30 = vadd.f32 %v4989_v47, %v3599_v14 }
 0x197   :  { %v1003_v9 = vadd.f32 %v1002_v15, %v3659_v34  ;;  %v1396_v55 = vpack.c.bf16 %v1352_v21, %v1350_v11  ;;  %v1289_v4 = vadd.f32 %v1179_v22, %v1177_v58  ;;  %v816_v23 = vadd.f32 %v3937_v1, %v3647_v42  ;;  %v4128_v1 = vpop.f32.mrf.mxu1 }
 0x198   :  { %v820_v40 = vadd.f32 %v3976_v13, %v3647_v42  ;;  %v1004_v0 = vpop.f32.mrf.mxu0  ;;  %v1291_v18 = vadd.f32 %v1185_v20, %v1183_v26  ;;  %v1182_v45 = vmax.f32 %v1001_v3, 0.0  ;;  %v1290_v31 = vadd.f32 %v1180_v44, %v1178_v59 }
 0x199   :  { %v1187_v51 = vmax.f32 %v1003_v9, 0.0  ;;  %v1005_v57 = vadd.f32 %v1004_v0, %v3661_v27  ;;  %1648 = vmatprep.mubr.bf16.mxu1 %v1396_v55  ;;  %v1292_v50 = vadd.f32 %v1186_v63, %v1184_v5  ;;  %v818_v54 = vadd.f32 %v3950_v17, %v3657_v25  ;;  %v4138_v7 = vpop.f32.mrf.mxu1 }
 0x19a   :  { %v822_v58 = vadd.f32 %v3989_v39, %v3657_v25  ;;  %v1008_v12 = vpop.f32.mrf.mxu0  ;;  %v1353_v56 = vadd.f32 %v1289_v4, %v1181_v37  ;;  %1649 = vmatmul.mubr.bf16.gmra.mxu1 %v1395_v19  ;;  %v4133_v53 = vadd.f32 %v4990_v43, %v3601_v29  ;;  %v629_v28 = vadd.f32 %v4991_v62, %v3601_v29 }
 0x19b   :  { %v1355_v13 = vadd.f32 %v1291_v18, %v1187_v51  ;;  %v1188_v48 = vmax.f32 %v1005_v57, 0.0  ;;  %v1009_v10 = vadd.f32 %v1008_v12, %v3659_v34  ;;  %v1191_v17 = vmax.f32 %v816_v23, 0.0 }
 0x19c   :  { %v1197_v32 = vmax.f32 %v820_v40, 0.0  ;;  %v1010_v59 = vpop.f32.mrf.mxu0  ;;  %v1354_v39 = vadd.f32 %v1290_v31, %v1182_v45  ;;  %v1189_v8 = vmax.f32 %v623_v41, 0.0  ;;  %v1190_v11 = vmax.f32 %v625_v6, 0.0  ;;  %v2884_v6 = vld [vmem:[%s4862_s6 + $0x8] sm:$0xff]   ;;  %v4153_v45 = vpop.f32.mrf.mxu1 }
 0x19d   :  { %v1397_v26 = vpack.c.bf16 %v1355_v13, %v1353_v56  ;;  %v1356_v22 = vadd.f32 %v1292_v50, %v1188_v48  ;;  %v1011_v20 = vadd.f32 %v1010_v59, %v3661_v27  ;;  %v1192_v21 = vmax.f32 %v818_v54, 0.0  ;;  %2725 = vmatprep.subr.bf16.mxu0 %v2884_v6 }
 0x19e   :  { %v1198_v3 = vmax.f32 %v822_v58, 0.0  ;;  %v1012_v19 = vpop.f32.mrf.mxu0  ;;  %v1195_v5 = vmax.f32 %v627_v30, 0.0  ;;  %v1193_v44 = vmax.f32 %v1009_v10, 0.0  ;;  %v1196_v35 = vmax.f32 %v629_v28, 0.0  ;;  %2726 = vmatpush3.bf16.msra.mxu0 %v2884_v6 }
 0x19f   :  { %v1013_v63 = vadd.f32 %v1012_v19, %v3659_v34  ;;  %v1398_v15 = vpack.c.bf16 %v1356_v22, %v1354_v39  ;;  %v1293_v37 = vadd.f32 %v1191_v17, %v1189_v8  ;;  %v826_v9 = vadd.f32 %v4017_v61, %v3647_v42  ;;  %v851_v39 = vpop.f32.mrf.mxu1  ;;  %v4993_v8 = vld [vmem:[#allocation4_spill] sm:$0xff] }
 0x1a0   :  { %v830_v55 = vadd.f32 %v4048_v46, %v3647_v42  ;;  %v1014_v41 = vpop.f32.mrf.mxu0  ;;  %v1295_v47 = vadd.f32 %v1197_v32, %v1195_v5  ;;  %v1194_v30 = vmax.f32 %v1011_v20, 0.0  ;;  %v1294_v40 = vadd.f32 %v1192_v21, %v1190_v11  ;;  %v4994_v21 = vld [vmem:[#allocation43_spill] sm:$0xff] }
 0x1a1   :  { %v1199_v4 = vmax.f32 %v1013_v63, 0.0  ;;  %v1015_v23 = vadd.f32 %v1014_v41, %v3661_v27  ;;  %1656 = vmatprep.mubr.bf16.mxu1 %v1398_v15  ;;  %v1296_v0 = vadd.f32 %v1198_v3, %v1196_v35  ;;  %v828_v18 = vadd.f32 %v4028_v16, %v3657_v25 }
 0x1a2   :  { %v832_v61 = vadd.f32 %v4057_v52, %v3657_v25  ;;  %v1018_v46 = vpop.f32.mrf.mxu0  ;;  %v1357_v51 = vadd.f32 %v1293_v37, %v1193_v44  ;;  %1657 = vmatmul.mubr.bf16.gmra.mxu1 %v1397_v26  ;;  %v1207_v54 = vmax.f32 %v3776_v49, 0.0  ;;  %v1208_v58 = vmax.f32 %v3780_v60, 0.0  ;;  %v2885_v52 = vld [vmem:[%s4862_s6] sm:$0xff]   ;;  %v4992_v60 = vld [vmem:[#allocation3_spill] sm:$0xff] }
 0x1a3   :  { %v1359_v57 = vadd.f32 %v1295_v47, %v1199_v4  ;;  %v1200_v31 = vmax.f32 %v1015_v23, 0.0  ;;  %v1019_v50 = vadd.f32 %v1018_v46, %v3659_v34  ;;  %v1203_v12 = vmax.f32 %v826_v9, 0.0  ;;  %2727 = vmatprep.subr.bf16.mxu0 %v2885_v52  ;;  %v4996_v37 = vld [vmem:[#allocation46_spill] sm:$0xff] }
 0x1a4   :  { %v1209_v16 = vmax.f32 %v830_v55, 0.0  ;;  %v1020_v56 = vpop.f32.mrf.mxu0  ;;  %v1358_v13 = vadd.f32 %v1294_v40, %v1194_v30  ;;  %v1213_v62 = vmax.f32 %v3788_v24, 0.0  ;;  %v1214_v28 = vmax.f32 %v4133_v53, 0.0  ;;  %2728 = vmatpush3.bf16.msra.mxu0 %v2885_v52  ;;  %v4182_v30 = vpop.f32.mrf.mxu1 }
 0x1a5   :  { %v1399_v48 = vpack.c.bf16 %v1359_v57, %v1357_v51  ;;  %v1360_v10 = vadd.f32 %v1296_v0, %v1200_v31  ;;  %v1021_v43 = vadd.f32 %v1020_v56, %v3661_v27  ;;  %v1204_v17 = vmax.f32 %v828_v18, 0.0 }
 0x1a6   :  { %v1210_v49 = vmax.f32 %v832_v61, 0.0  ;;  %v1022_v32 = vpop.f32.mrf.mxu0  ;;  %v647_v59 = vadd.f32 %v4992_v60, %v3599_v14  ;;  %v1205_v26 = vmax.f32 %v1019_v50, 0.0  ;;  %v649_v11 = vadd.f32 %v4993_v8, %v3601_v29 }
 0x1a7   :  { %v1023_v22 = vadd.f32 %v1022_v32, %v3659_v34  ;;  %v1400_v20 = vpack.c.bf16 %v1360_v10, %v1358_v13  ;;  %v4995_v24 = vmax.f32 %v4994_v21, 0.0  ;;  %v836_v53 = vadd.f32 %v4079_v2, %v3647_v42  ;;  %v5000_v13 = vld [vmem:[#allocation7_spill] sm:$0xff]  ;;  %v857_v10 = vpop.f32.mrf.mxu1  ;;  %v5001_v32 = vld [vmem:[#allocation8_spill] sm:$0xff] }
 0x1a8   :  { %v840_v19 = vadd.f32 %v4106_v38, %v3647_v42  ;;  %v1024_v5 = vpop.f32.mrf.mxu0  ;;  %v1299_v44 = vadd.f32 %v1209_v16, %v1207_v54  ;;  %v1206_v63 = vmax.f32 %v1021_v43, 0.0  ;;  %v4997_v9 = vmax.f32 %v4996_v37, 0.0 }
 0x1a9   :  { %v1297_v3 = vadd.f32 %v1203_v12, %v4995_v24  ;;  %v1211_v15 = vmax.f32 %v1023_v22, 0.0  ;;  %v1025_v35 = vadd.f32 %v1024_v5, %v3661_v27  ;;  %1664 = vmatprep.mubr.bf16.mxu1 %v1400_v20  ;;  %v1300_v41 = vadd.f32 %v1210_v49, %v1208_v58  ;;  %v4999_v58 = vld [vmem:[#allocation6_spill] sm:$0xff] }
 0x1aa   :  { %v1298_v55 = vadd.f32 %v1204_v17, %v4997_v9  ;;  %v838_v6 = vadd.f32 %v4088_v33, %v3657_v25  ;;  %v842_v2 = vadd.f32 %v4114_v36, %v3657_v25  ;;  %v1028_v47 = vpop.f32.mrf.mxu0  ;;  %1665 = vmatmul.mubr.bf16.gmra.mxu1 %v1399_v48  ;;  %v1219_v0 = vmax.f32 %v647_v59, 0.0  ;;  %v4998_v36 = vld [vmem:[#allocation5_spill] sm:$0xff] }
 0x1ab   :  { %v1361_v38 = vadd.f32 %v1297_v3, %v1205_v26  ;;  %v1363_v4 = vadd.f32 %v1299_v44, %v1211_v15  ;;  %v1212_v23 = vmax.f32 %v1025_v35, 0.0  ;;  %v1029_v40 = vadd.f32 %v1028_v47, %v3659_v34  ;;  %v859_v44 = vpop.f32.mrf.mxu1 }
 0x1ac   :  { %v1220_v18 = vmax.f32 %v649_v11, 0.0  ;;  %v1215_v61 = vmax.f32 %v836_v53, 0.0  ;;  %v1221_v46 = vmax.f32 %v840_v19, 0.0  ;;  %v1030_v51 = vpop.f32.mrf.mxu0  ;;  %v1362_v57 = vadd.f32 %v1298_v55, %v1206_v63 }
 0x1ad   :  { %v1401_v31 = vpack.c.bf16 %v1363_v4, %v1361_v38  ;;  %v1364_v33 = vadd.f32 %v1300_v41, %v1212_v23  ;;  %v1031_v50 = vadd.f32 %v1030_v51, %v3661_v27  ;;  %v653_v54 = vadd.f32 %v4998_v36, %v3599_v14 }
 0x1ae   :  { %v655_v12 = vadd.f32 %v4999_v58, %v3601_v29  ;;  %v1216_v16 = vmax.f32 %v838_v6, 0.0  ;;  %v1222_v56 = vmax.f32 %v842_v2, 0.0  ;;  %v1032_v52 = vpop.f32.mrf.mxu0  ;;  %v657_v48 = vadd.f32 %v5000_v13, %v3599_v14 }
 0x1af   :  { %v1217_v43 = vmax.f32 %v1029_v40, 0.0  ;;  %v1033_v17 = vadd.f32 %v1032_v52, %v3659_v34  ;;  %v1402_v49 = vpack.c.bf16 %v1364_v33, %v1362_v57  ;;  %v659_v60 = vadd.f32 %v5001_v32, %v3601_v29  ;;  %v5002_v40 = vld [vmem:[#allocation9_spill] sm:$0xff]  ;;  %v5003_v57 = vld [vmem:[#allocation11_spill] sm:$0xff] }
 0x1b0   :  { %v1301_v59 = vadd.f32 %v1215_v61, %v1213_v62  ;;  %v846_v26 = vadd.f32 %v4128_v1, %v3647_v42  ;;  %v850_v22 = vadd.f32 %v4153_v45, %v3647_v42  ;;  %v1034_v20 = vpop.f32.mrf.mxu0  ;;  %v1303_v8 = vadd.f32 %v1221_v46, %v1219_v0 }
 0x1b1   :  { %v1218_v11 = vmax.f32 %v1031_v50, 0.0  ;;  %v1223_v21 = vmax.f32 %v1033_v17, 0.0  ;;  %v1035_v24 = vadd.f32 %v1034_v20, %v3661_v27  ;;  %1672 = vmatprep.mubr.bf16.mxu1 %v1402_v49  ;;  %v1302_v3 = vadd.f32 %v1216_v16, %v1214_v28 }
 0x1b2   :  { %v1304_v53 = vadd.f32 %v1222_v56, %v1220_v18  ;;  %v848_v19 = vadd.f32 %v4138_v7, %v3657_v25  ;;  %v852_v62 = vadd.f32 %v851_v39, %v3657_v25  ;;  %v1038_v5 = vpop.f32.mrf.mxu0  ;;  %v1365_v1 = vadd.f32 %v1301_v59, %v1217_v43  ;;  %1673 = vmatmul.mubr.bf16.gmra.mxu1 %v1401_v31  ;;  %v861_v18 = vpop.f32.mrf.mxu1  ;;  %v5005_v59 = vld [vmem:[#allocation12_spill] sm:$0xff] }
 0x1b3   :  { %v1367_v63 = vadd.f32 %v1303_v8, %v1223_v21  ;;  %v1224_v15 = vmax.f32 %v1035_v24, 0.0  ;;  %v1039_v45 = vadd.f32 %v1038_v5, %v3659_v34  ;;  %v1225_v35 = vmax.f32 %v653_v54, 0.0 }
 0x1b4   :  { %v1226_v37 = vmax.f32 %v655_v12, 0.0  ;;  %v1227_v9 = vmax.f32 %v846_v26, 0.0  ;;  %v1233_v55 = vmax.f32 %v850_v22, 0.0  ;;  %v1040_v41 = vpop.f32.mrf.mxu0  ;;  %v1366_v28 = vadd.f32 %v1302_v3, %v1218_v11 }
 0x1b5   :  { %v1403_v6 = vpack.c.bf16 %v1367_v63, %v1365_v1  ;;  %v1368_v2 = vadd.f32 %v1304_v53, %v1224_v15  ;;  %v1041_v7 = vadd.f32 %v1040_v41, %v3661_v27  ;;  %v1231_v47 = vmax.f32 %v657_v48, 0.0 }
 0x1b6   :  { %v1232_v39 = vmax.f32 %v659_v60, 0.0  ;;  %v1228_v38 = vmax.f32 %v848_v19, 0.0  ;;  %v1234_v4 = vmax.f32 %v852_v62, 0.0  ;;  %v1042_v23 = vpop.f32.mrf.mxu0  ;;  %v663_v0 = vadd.f32 %v5002_v40, %v3599_v14 }
 0x1b7   :  { %v1229_v61 = vmax.f32 %v1039_v45, 0.0  ;;  %v1043_v46 = vadd.f32 %v1042_v23, %v3659_v34  ;;  %v1404_v51 = vpack.c.bf16 %v1368_v2, %v1366_v28  ;;  %v667_v31 = vadd.f32 %v5003_v57, %v3599_v14 }
 0x1b8   :  { %v1305_v33 = vadd.f32 %v1227_v9, %v1225_v35  ;;  %v856_v50 = vadd.f32 %v4182_v30, %v3647_v42  ;;  %v860_v36 = vadd.f32 %v859_v44, %v3647_v42  ;;  %v1044_v54 = vpop.f32.mrf.mxu0  ;;  %v1307_v58 = vadd.f32 %v1233_v55, %v1231_v47  ;;  %v5004_v42 = vld [vmem:[#allocation10_spill] sm:$0xff] }
 0x1b9   :  { %v1230_v12 = vmax.f32 %v1041_v7, 0.0  ;;  %v1235_v16 = vmax.f32 %v1043_v46, 0.0  ;;  %v1045_v56 = vadd.f32 %v1044_v54, %v3661_v27  ;;  %1680 = vmatprep.mubr.bf16.mxu1 %v1404_v51  ;;  %v1306_v52 = vadd.f32 %v1228_v38, %v1226_v37 }
 0x1ba   :  { %v1308_v13 = vadd.f32 %v1234_v4, %v1232_v39  ;;  %v858_v48 = vadd.f32 %v857_v10, %v3657_v25  ;;  %v862_v43 = vadd.f32 %v861_v18, %v3657_v25  ;;  %v1048_v14 = vpop.f32.mrf.mxu0  ;;  %v1369_v17 = vadd.f32 %v1305_v33, %v1229_v61  ;;  %1681 = vmatmul.mubr.bf16.gmra.mxu1 %v1403_v6 }
 0x1bb   :  { %v1371_v49 = vadd.f32 %v1307_v58, %v1235_v16  ;;  %v1236_v32 = vmax.f32 %v1045_v56, 0.0  ;;  %v1049_v30 = vadd.f32 %v1048_v14, %v3659_v34  ;;  %v665_v60 = vadd.f32 %v5004_v42, %v3601_v29 }
 0x1bc   :  { %v669_v26 = vadd.f32 %v5005_v59, %v3601_v29  ;;  %v1239_v22 = vmax.f32 %v856_v50, 0.0  ;;  %v1245_v20 = vmax.f32 %v860_v36, 0.0  ;;  %v1050_v8 = vpop.f32.mrf.mxu0  ;;  %v1370_v11 = vadd.f32 %v1306_v52, %v1230_v12 }
 0x1bd   :  { %v1405_v10 = vpack.c.bf16 %v1371_v49, %v1369_v17  ;;  %v1372_v21 = vadd.f32 %v1308_v13, %v1236_v32  ;;  %v1051_v25 = vadd.f32 %v1050_v8, %v3661_v27  ;;  %v1237_v24 = vmax.f32 %v663_v0, 0.0 }
 0x1be   :  { %v1243_v3 = vmax.f32 %v667_v31, 0.0  ;;  %v1240_v53 = vmax.f32 %v858_v48, 0.0  ;;  %v1052_v19 = vpop.f32.mrf.mxu0  ;;  %v1246_v62 = vmax.f32 %v862_v43, 0.0  ;;  %v1241_v5 = vmax.f32 %v1049_v30, 0.0 }
 0x1bf   :  { %v1053_v44 = vadd.f32 %v1052_v19, %v3659_v34  ;;  %v1406_v1 = vpack.c.bf16 %v1372_v21, %v1370_v11  ;;  %v1238_v63 = vmax.f32 %v665_v60, 0.0  ;;  %v1244_v15 = vmax.f32 %v669_v26, 0.0 }
 0x1c0   :  { %v1309_v29 = vadd.f32 %v1239_v22, %v1237_v24  ;;  %v1054_v45 = vpop.f32.mrf.mxu0  ;;  %v1311_v35 = vadd.f32 %v1245_v20, %v1243_v3  ;;  %v1242_v37 = vmax.f32 %v1051_v25, 0.0 }
 0x1c1   :  { %v1247_v9 = vmax.f32 %v1053_v44, 0.0  ;;  %v1055_v55 = vadd.f32 %v1054_v45, %v3661_v27  ;;  %1688 = vmatprep.mubr.bf16.mxu1 %v1406_v1  ;;  %v1310_v41 = vadd.f32 %v1240_v53, %v1238_v63  ;;  %v1312_v28 = vadd.f32 %v1246_v62, %v1244_v15  ;;  %v4227_v27 = vld [vmem:[%s4863_s5] ss:$0 sm:$0xff] }
 0x1c2   :  { %v1373_v6 = vadd.f32 %v1309_v29, %v1241_v5  ;;  %1689 = vmatmul.mubr.bf16.gmra.mxu1 %v1405_v10 }
 0x1c3   :  { %v1375_v2 = vadd.f32 %v1311_v35, %v1247_v9  ;;  %v1248_v7 = vmax.f32 %v1055_v55, 0.0  ;;  %v1374_v47 = vadd.f32 %v1310_v41, %v1242_v37 }
 0x1c5   :  { %v1407_v39 = vpack.c.bf16 %v1375_v2, %v1373_v6  ;;  %v1376_v34 = vadd.f32 %v1312_v28, %v1248_v7 }
 0x1c7   :  { %v1408_v38 = vpack.c.bf16 %v1376_v34, %v1374_v47 }
 0x1c9   :  { %1696 = vmatprep.mubr.bf16.mxu1 %v1408_v38 }
 0x1ca   :  { %1697 = vmatmul.mubr.bf16.gmra.mxu1 %v1407_v39 }
 0x212   :  { %v2605_v4 = vpop.f32.mrf.mxu1 }
 0x214   :  { %v2606_v23 = vpop.f32.mrf.mxu1 }
 0x215   :  { %v2607_v40 = vadd.f32 %v2606_v23, %v2605_v4 }
 0x216   :  { %v2608_v0 = vpop.f32.mrf.mxu1 }
 0x217   :  { %v1579_v61 = vadd.f32 %v2607_v40, %v4227_v27 }
 0x218   :  { %v2609_v18 = vpop.f32.mrf.mxu1 }
 0x219   :  { %v2610_v46 = vadd.f32 %v2609_v18, %v2608_v0  ;;  %v1705_v33 = vmax.f32 %v1579_v61, 0.0 }
 0x21a   :  { %v2611_v51 = vpop.f32.mrf.mxu1 }
 0x21b   :  { %v1582_v57 = vadd.f32 %v2610_v46, %v4227_v27 }
 0x21c   :  { %v2612_v31 = vpop.f32.mrf.mxu1 }
 0x21d   :  { %v1706_v50 = vmax.f32 %v1582_v57, 0.0  ;;  %v2613_v36 = vadd.f32 %v2612_v31, %v2611_v51 }
 0x21e   :  { %v2614_v54 = vpop.f32.mrf.mxu1 }
 0x21f   :  { %v1737_v58 = vpack.c.bf16 %v1706_v50, %v1705_v33  ;;  %v1587_v16 = vadd.f32 %v2613_v36, %v4227_v27 }
 0x220   :  { %v2615_v12 = vpop.f32.mrf.mxu1 }
 0x221   :  { %v2616_v56 = vadd.f32 %v2615_v12, %v2614_v54  ;;  %2729 = vmatprep.mubr.msk.bf16.mxu0 %vm1792_vm0, %v1737_v58  ;;  %v1707_v43 = vmax.f32 %v1587_v16, 0.0 }
 0x222   :  { %v2617_v52 = vpop.f32.mrf.mxu1 }
 0x223   :  { %v1590_v13 = vadd.f32 %v2616_v56, %v4227_v27 }
 0x224   :  { %v2618_v48 = vpop.f32.mrf.mxu1 }
 0x225   :  { %v1708_v14 = vmax.f32 %v1590_v13, 0.0  ;;  %v2619_v17 = vadd.f32 %v2618_v48, %v2617_v52 }
 0x226   :  { %v2620_v49 = vpop.f32.mrf.mxu1 }
 0x227   :  { %v1738_v32 = vpack.c.bf16 %v1708_v14, %v1707_v43  ;;  %v1595_v42 = vadd.f32 %v2619_v17, %v4227_v27 }
 0x228   :  { %v2621_v30 = vpop.f32.mrf.mxu1 }
 0x229   :  { %v2622_v60 = vadd.f32 %v2621_v30, %v2620_v49  ;;  %2730 = vmatmul.mubr.msk.bf16.vlgmr.msra.gmra.mxu0 %vm1792_vm0, %v1738_v32  ;;  %v1709_v20 = vmax.f32 %v1595_v42, 0.0 }
 0x22a   :  { %v2623_v59 = vpop.f32.mrf.mxu1 }
 0x22b   :  { %v1598_v26 = vadd.f32 %v2622_v60, %v4227_v27 }
 0x22c   :  { %v2624_v22 = vpop.f32.mrf.mxu1 }
 0x22d   :  { %v1710_v8 = vmax.f32 %v1598_v26, 0.0  ;;  %v2625_v11 = vadd.f32 %v2624_v22, %v2623_v59 }
 0x22e   :  { %v2626_v10 = vpop.f32.mrf.mxu1 }
 0x22f   :  { %v1739_v21 = vpack.c.bf16 %v1710_v8, %v1709_v20  ;;  %v1603_v24 = vadd.f32 %v2625_v11, %v4227_v27 }
 0x230   :  { %v2627_v25 = vpop.f32.mrf.mxu1 }
 0x231   :  { %v2628_v3 = vadd.f32 %v2627_v25, %v2626_v10  ;;  %2733 = vmatprep.mubr.msk.bf16.mxu0 %vm1792_vm0, %v1739_v21  ;;  %v1711_v5 = vmax.f32 %v1603_v24, 0.0 }
 0x232   :  { %v2629_v53 = vpop.f32.mrf.mxu1 }
 0x233   :  { %v1606_v19 = vadd.f32 %v2628_v3, %v4227_v27 }
 0x234   :  { %v2630_v62 = vpop.f32.mrf.mxu1 }
 0x235   :  { %v1712_v44 = vmax.f32 %v1606_v19, 0.0  ;;  %v2631_v1 = vadd.f32 %v2630_v62, %v2629_v53 }
 0x236   :  { %v2632_v63 = vpop.f32.mrf.mxu1 }
 0x237   :  { %v1740_v15 = vpack.c.bf16 %v1712_v44, %v1711_v5  ;;  %v1611_v45 = vadd.f32 %v2631_v1, %v4227_v27 }
 0x238   :  { %v2633_v29 = vpop.f32.mrf.mxu1 }
 0x239   :  { %v2634_v35 = vadd.f32 %v2633_v29, %v2632_v63  ;;  %2734 = vmatmul.mubr.msk.bf16.gmra.mxu0 %vm1792_vm0, %v1740_v15  ;;  %v1713_v41 = vmax.f32 %v1611_v45, 0.0 }
 0x23a   :  { %v2635_v37 = vpop.f32.mrf.mxu1 }
 0x23b   :  { %v1614_v9 = vadd.f32 %v2634_v35, %v4227_v27 }
 0x23c   :  { %v2636_v55 = vpop.f32.mrf.mxu1 }
 0x23d   :  { %v1714_v28 = vmax.f32 %v1614_v9, 0.0  ;;  %v2637_v6 = vadd.f32 %v2636_v55, %v2635_v37 }
 0x23e   :  { %v2638_v2 = vpop.f32.mrf.mxu1 }
 0x23f   :  { %v1741_v7 = vpack.c.bf16 %v1714_v28, %v1713_v41  ;;  %v1619_v39 = vadd.f32 %v2637_v6, %v4227_v27 }
 0x240   :  { %v2639_v47 = vpop.f32.mrf.mxu1 }
 0x241   :  { %v2640_v34 = vadd.f32 %v2639_v47, %v2638_v2  ;;  %2737 = vmatprep.mubr.msk.bf16.mxu0 %vm1792_vm0, %v1741_v7  ;;  %v1715_v40 = vmax.f32 %v1619_v39, 0.0 }
 0x242   :  { %v2641_v38 = vpop.f32.mrf.mxu1 }
 0x243   :  { %v1622_v4 = vadd.f32 %v2640_v34, %v4227_v27 }
 0x244   :  { %v2642_v23 = vpop.f32.mrf.mxu1 }
 0x245   :  { %v1716_v0 = vmax.f32 %v1622_v4, 0.0  ;;  %v2643_v18 = vadd.f32 %v2642_v23, %v2641_v38 }
 0x246   :  { %v2644_v61 = vpop.f32.mrf.mxu1 }
 0x247   :  { %v1742_v46 = vpack.c.bf16 %v1716_v0, %v1715_v40  ;;  %v1627_v57 = vadd.f32 %v2643_v18, %v4227_v27 }
 0x248   :  { %v2645_v51 = vpop.f32.mrf.mxu1 }
 0x249   :  { %v2646_v31 = vadd.f32 %v2645_v51, %v2644_v61  ;;  %2738 = vmatmul.mubr.msk.bf16.gmra.mxu0 %vm1792_vm0, %v1742_v46  ;;  %v1717_v54 = vmax.f32 %v1627_v57, 0.0 }
 0x24a   :  { %v2647_v33 = vpop.f32.mrf.mxu1 }
 0x24b   :  { %v1630_v50 = vadd.f32 %v2646_v31, %v4227_v27 }
 0x24c   :  { %v2648_v36 = vpop.f32.mrf.mxu1 }
 0x24d   :  { %v1718_v58 = vmax.f32 %v1630_v50, 0.0  ;;  %v2649_v12 = vadd.f32 %v2648_v36, %v2647_v33 }
 0x24e   :  { %v2650_v16 = vpop.f32.mrf.mxu1 }
 0x24f   :  { %v1743_v56 = vpack.c.bf16 %v1718_v58, %v1717_v54  ;;  %v1635_v13 = vadd.f32 %v2649_v12, %v4227_v27 }
 0x250   :  { %v2651_v52 = vpop.f32.mrf.mxu1 }
 0x251   :  { %v2652_v48 = vadd.f32 %v2651_v52, %v2650_v16  ;;  %2741 = vmatprep.mubr.msk.bf16.mxu0 %vm1792_vm0, %v1743_v56  ;;  %v1719_v49 = vmax.f32 %v1635_v13, 0.0 }
 0x252   :  { %v2653_v43 = vpop.f32.mrf.mxu1 }
 0x253   :  { %v1638_v14 = vadd.f32 %v2652_v48, %v4227_v27 }
 0x254   :  { %v2654_v17 = vpop.f32.mrf.mxu1 }
 0x255   :  { %v1720_v32 = vmax.f32 %v1638_v14, 0.0  ;;  %v2655_v30 = vadd.f32 %v2654_v17, %v2653_v43 }
 0x256   :  { %v2656_v42 = vpop.f32.mrf.mxu1 }
 0x257   :  { %v1744_v60 = vpack.c.bf16 %v1720_v32, %v1719_v49  ;;  %v1643_v26 = vadd.f32 %v2655_v30, %v4227_v27 }
 0x258   :  { %v2657_v59 = vpop.f32.mrf.mxu1 }
 0x259   :  { %v2658_v22 = vadd.f32 %v2657_v59, %v2656_v42  ;;  %2742 = vmatmul.mubr.msk.bf16.gmra.mxu0 %vm1792_vm0, %v1744_v60  ;;  %v1721_v10 = vmax.f32 %v1643_v26, 0.0 }
 0x25a   :  { %v2659_v20 = vpop.f32.mrf.mxu1 }
 0x25b   :  { %v1646_v8 = vadd.f32 %v2658_v22, %v4227_v27 }
 0x25c   :  { %v2660_v11 = vpop.f32.mrf.mxu1 }
 0x25d   :  { %v1722_v21 = vmax.f32 %v1646_v8, 0.0  ;;  %v2661_v25 = vadd.f32 %v2660_v11, %v2659_v20 }
 0x25e   :  { %v2662_v24 = vpop.f32.mrf.mxu1 }
 0x25f   :  { %v1745_v3 = vpack.c.bf16 %v1722_v21, %v1721_v10  ;;  %v1651_v19 = vadd.f32 %v2661_v25, %v4227_v27 }
 0x260   :  { %v2663_v53 = vpop.f32.mrf.mxu1 }
 0x261   :  { %v2664_v62 = vadd.f32 %v2663_v53, %v2662_v24  ;;  %2745 = vmatprep.mubr.msk.bf16.mxu0 %vm1792_vm0, %v1745_v3  ;;  %v1723_v63 = vmax.f32 %v1651_v19, 0.0 }
 0x262   :  { %v2665_v5 = vpop.f32.mrf.mxu1 }
 0x263   :  { %v1654_v44 = vadd.f32 %v2664_v62, %v4227_v27 }
 0x264   :  { %v2666_v1 = vpop.f32.mrf.mxu1 }
 0x265   :  { %v1724_v15 = vmax.f32 %v1654_v44, 0.0  ;;  %v2667_v29 = vadd.f32 %v2666_v1, %v2665_v5 }
 0x266   :  { %v2668_v45 = vpop.f32.mrf.mxu1 }
 0x267   :  { %v1746_v35 = vpack.c.bf16 %v1724_v15, %v1723_v63  ;;  %v1659_v9 = vadd.f32 %v2667_v29, %v4227_v27 }
 0x268   :  { %v2669_v37 = vpop.f32.mrf.mxu1 }
 0x269   :  { %v2670_v55 = vadd.f32 %v2669_v37, %v2668_v45  ;;  %2746 = vmatmul.mubr.msk.bf16.gmra.mxu0 %vm1792_vm0, %v1746_v35  ;;  %v1725_v2 = vmax.f32 %v1659_v9, 0.0  ;;  %v4280_v35 = vld [vmem:[%s4864_s7] ss:$0 sm:$0xff] }
 0x26a   :  { %v2671_v41 = vpop.f32.mrf.mxu1 }
 0x26b   :  { %v1662_v28 = vadd.f32 %v2670_v55, %v4227_v27 }
 0x26c   :  { %v2672_v6 = vpop.f32.mrf.mxu1 }
 0x26d   :  { %v1726_v7 = vmax.f32 %v1662_v28, 0.0  ;;  %v2673_v47 = vadd.f32 %v2672_v6, %v2671_v41 }
 0x26e   :  { %v2674_v39 = vpop.f32.mrf.mxu1 }
 0x26f   :  { %v1747_v34 = vpack.c.bf16 %v1726_v7, %v1725_v2  ;;  %v1667_v4 = vadd.f32 %v2673_v47, %v4227_v27 }
 0x270   :  { %v2675_v38 = vpop.f32.mrf.mxu1 }
 0x271   :  { %v2676_v23 = vadd.f32 %v2675_v38, %v2674_v39  ;;  %2749 = vmatprep.mubr.msk.bf16.mxu0 %vm1792_vm0, %v1747_v34  ;;  %v1727_v61 = vmax.f32 %v1667_v4, 0.0 }
 0x272   :  { %v2677_v40 = vpop.f32.mrf.mxu1 }
 0x273   :  { %v1670_v0 = vadd.f32 %v2676_v23, %v4227_v27 }
 0x274   :  { %v2678_v18 = vpop.f32.mrf.mxu1 }
 0x275   :  { %v1728_v46 = vmax.f32 %v1670_v0, 0.0  ;;  %v2679_v51 = vadd.f32 %v2678_v18, %v2677_v40 }
 0x276   :  { %v2680_v57 = vpop.f32.mrf.mxu1 }
 0x277   :  { %v1748_v31 = vpack.c.bf16 %v1728_v46, %v1727_v61  ;;  %v1675_v50 = vadd.f32 %v2679_v51, %v4227_v27 }
 0x278   :  { %v2681_v33 = vpop.f32.mrf.mxu1 }
 0x279   :  { %v2682_v36 = vadd.f32 %v2681_v33, %v2680_v57  ;;  %2750 = vmatmul.mubr.msk.bf16.gmra.mxu0 %vm1792_vm0, %v1748_v31  ;;  %v1729_v16 = vmax.f32 %v1675_v50, 0.0 }
 0x27a   :  { %v2683_v54 = vpop.f32.mrf.mxu1 }
 0x27b   :  { %v1678_v58 = vadd.f32 %v2682_v36, %v4227_v27 }
 0x27c   :  { %v2684_v12 = vpop.f32.mrf.mxu1 }
 0x27d   :  { %v1730_v56 = vmax.f32 %v1678_v58, 0.0  ;;  %v2685_v52 = vadd.f32 %v2684_v12, %v2683_v54 }
 0x27e   :  { %v2686_v13 = vpop.f32.mrf.mxu1 }
 0x27f   :  { %v1749_v48 = vpack.c.bf16 %v1730_v56, %v1729_v16  ;;  %v1683_v14 = vadd.f32 %v2685_v52, %v4227_v27 }
 0x280   :  { %v2687_v43 = vpop.f32.mrf.mxu1 }
 0x281   :  { %v2688_v17 = vadd.f32 %v2687_v43, %v2686_v13  ;;  %2753 = vmatprep.mubr.msk.bf16.mxu0 %vm1792_vm0, %v1749_v48  ;;  %v1731_v42 = vmax.f32 %v1683_v14, 0.0 }
 0x282   :  { %v2689_v49 = vpop.f32.mrf.mxu1 }
 0x283   :  { %v1686_v32 = vadd.f32 %v2688_v17, %v4227_v27 }
 0x284   :  { %v2690_v30 = vpop.f32.mrf.mxu1 }
 0x285   :  { %v1732_v60 = vmax.f32 %v1686_v32, 0.0  ;;  %v2691_v59 = vadd.f32 %v2690_v30, %v2689_v49 }
 0x286   :  { %v2692_v26 = vpop.f32.mrf.mxu1 }
 0x287   :  { %v1750_v22 = vpack.c.bf16 %v1732_v60, %v1731_v42  ;;  %v1691_v8 = vadd.f32 %v2691_v59, %v4227_v27 }
 0x288   :  { %v2693_v20 = vpop.f32.mrf.mxu1 }
 0x289   :  { %v2694_v11 = vadd.f32 %v2693_v20, %v2692_v26  ;;  %2754 = vmatmul.mubr.msk.bf16.gmra.mxu0 %vm1792_vm0, %v1750_v22  ;;  %v1733_v24 = vmax.f32 %v1691_v8, 0.0 }
 0x28a   :  { %v2695_v10 = vpop.f32.mrf.mxu1 }
 0x28b   :  { %v1694_v21 = vadd.f32 %v2694_v11, %v4227_v27 }
 0x28c   :  { %v2696_v25 = vpop.f32.mrf.mxu1 }
 0x28d   :  { %v1734_v3 = vmax.f32 %v1694_v21, 0.0  ;;  %v2697_v53 = vadd.f32 %v2696_v25, %v2695_v10 }
 0x28e   :  { %v2698_v19 = vpop.f32.mrf.mxu1 }
 0x28f   :  { %v1751_v62 = vpack.c.bf16 %v1734_v3, %v1733_v24  ;;  %v1699_v44 = vadd.f32 %v2697_v53, %v4227_v27 }
 0x290   :  { %v2699_v5 = vpop.f32.mrf.mxu1 }
 0x291   :  { %v2700_v1 = vadd.f32 %v2699_v5, %v2698_v19  ;;  %2757 = vmatprep.mubr.msk.bf16.mxu0 %vm1792_vm0, %v1751_v62  ;;  %v1735_v15 = vmax.f32 %v1699_v44, 0.0 }
 0x293   :  { %v1702_v63 = vadd.f32 %v2700_v1, %v4227_v27 }
 0x295   :  { %v1736_v29 = vmax.f32 %v1702_v63, 0.0 }
 0x297   :  { %v1752_v45 = vpack.c.bf16 %v1736_v29, %v1735_v15 }
 0x299   :  { %2758 = vmatmul.mubr.msk.bf16.gmra.mxu0 %vm1792_vm0, %v1752_v45 }
 0x2e9   :  { %v2731_v37 = vpop.f32.mrf.mxu0 }
 0x2ea   :  { %v4283_v9 = vadd.f32 %v2731_v37, %v4280_v35 }
 0x2eb   :  { %v1875_v55 = vpop.f32.mrf.mxu0 }
 0x2ec   :  { %v4286_v41 = vadd.f32 %v4280_v35, %v1875_v55  ;;  %v2009_v27 = vsel %vm2002_vm1, %v4283_v9, -inf }
 0x2ed   :  { %2010 = vmax.xlane.f32.xlu1 %v2009_v27  ;;  %v2732_v28 = vpop.f32.mrf.mxu0 }
 0x2ee   :  { %v4291_v6 = vadd.f32 %v2732_v28, %v4280_v35  ;;  %v2003_v2 = vsel %vm2002_vm1, %v4286_v41, -inf }
 0x2ef   :  { %v1878_v7 = vpop.f32.mrf.mxu0  ;;  %2004 = vmax.xlane.f32.xlu0 %v2003_v2 }
 0x2f0   :  { %v4296_v47 = vadd.f32 %v4280_v35, %v1878_v7  ;;  %v2012_v39 = vsel %vm2002_vm1, %v4291_v6, -inf }
 0x2f1   :  { %2013 = vmax.xlane.f32.xlu1 %v2012_v39 }
 0x2f2   :  { %v2006_v34 = vsel %vm2002_vm1, %v4296_v47, -inf }
 0x2f3   :  { %2007 = vmax.xlane.f32.xlu0 %v2006_v34 }
 0x2f9   :  { %v2735_v38 = vpop.f32.mrf.mxu0 }
 0x2fa   :  { %v4303_v4 = vadd.f32 %v2735_v38, %v4280_v35 }
 0x2fb   :  { %v1891_v23 = vpop.f32.mrf.mxu0 }
 0x2fc   :  { %v4306_v40 = vadd.f32 %v4280_v35, %v1891_v23  ;;  %v2021_v0 = vsel %vm2002_vm1, %v4303_v4, -inf }
 0x2fd   :  { %v2736_v18 = vpop.f32.mrf.mxu0  ;;  %2022 = vmax.xlane.f32.xlu0 %v2021_v0 }
 0x2fe   :  { %v4311_v61 = vadd.f32 %v2736_v18, %v4280_v35  ;;  %v2015_v31 = vsel %vm2002_vm1, %v4306_v40, -inf }
 0x2ff   :  { %v1894_v46 = vpop.f32.mrf.mxu0 }
 0x300   :  { %v4314_v51 = vadd.f32 %v4280_v35, %v1894_v46  ;;  %v2024_v57 = vsel %vm2002_vm1, %v4311_v61, -inf }
 0x301   :  { %2025 = vmax.xlane.f32.xlu1 %v2024_v57  ;;  %2016 = vmax.xlane.f32.xlu0 %v2015_v31 }
 0x302   :  { %v2018_v33 = vsel %vm2002_vm1, %v4314_v51, -inf }
 0x305   :  { %2019 = vmax.xlane.f32.xlu1 %v2018_v33 }
 0x309   :  { %v2739_v50 = vpop.f32.mrf.mxu0 }
 0x30a   :  { %v4323_v36 = vadd.f32 %v2739_v50, %v4280_v35 }
 0x30b   :  { %v1907_v54 = vpop.f32.mrf.mxu0 }
 0x30c   :  { %v4326_v58 = vadd.f32 %v4280_v35, %v1907_v54  ;;  %v2033_v12 = vsel %vm2002_vm1, %v4323_v36, -inf }
 0x30d   :  { %v2740_v16 = vpop.f32.mrf.mxu0  ;;  %2034 = vmax.xlane.f32.xlu0 %v2033_v12 }
 0x30e   :  { %v4331_v56 = vadd.f32 %v2740_v16, %v4280_v35  ;;  %v2027_v43 = vsel %vm2002_vm1, %v4326_v58, -inf }
 0x30f   :  { %v1910_v52 = vpop.f32.mrf.mxu0 }
 0x310   :  { %v4334_v13 = vadd.f32 %v4280_v35, %v1910_v52  ;;  %v2036_v48 = vsel %vm2002_vm1, %v4331_v56, -inf }
 0x311   :  { %2037 = vmax.xlane.f32.xlu1 %v2036_v48  ;;  %2028 = vmax.xlane.f32.xlu0 %v2027_v43 }
 0x312   :  { %v2030_v14 = vsel %vm2002_vm1, %v4334_v13, -inf }
 0x315   :  { %2031 = vmax.xlane.f32.xlu1 %v2030_v14 }
 0x319   :  { %v2743_v17 = vpop.f32.mrf.mxu0 }
 0x31a   :  { %v4343_v49 = vadd.f32 %v2743_v17, %v4280_v35 }
 0x31b   :  { %v1923_v32 = vpop.f32.mrf.mxu0 }
 0x31c   :  { %v4346_v30 = vadd.f32 %v4280_v35, %v1923_v32  ;;  %v2045_v42 = vsel %vm2002_vm1, %v4343_v49, -inf }
 0x31d   :  { %v2744_v60 = vpop.f32.mrf.mxu0  ;;  %2046 = vmax.xlane.f32.xlu0 %v2045_v42 }
 0x31e   :  { %v4351_v59 = vadd.f32 %v2744_v60, %v4280_v35  ;;  %v2039_v8 = vsel %vm2002_vm1, %v4346_v30, -inf }
 0x31f   :  { %v1926_v26 = vpop.f32.mrf.mxu0 }
 0x320   :  { %v4354_v22 = vadd.f32 %v4280_v35, %v1926_v26  ;;  %v2048_v20 = vsel %vm2002_vm1, %v4351_v59, -inf }
 0x321   :  { %2049 = vmax.xlane.f32.xlu1 %v2048_v20  ;;  %2040 = vmax.xlane.f32.xlu0 %v2039_v8 }
 0x322   :  { %v2042_v11 = vsel %vm2002_vm1, %v4354_v22, -inf }
 0x325   :  { %2043 = vmax.xlane.f32.xlu1 %v2042_v11 }
 0x329   :  { %v2747_v10 = vpop.f32.mrf.mxu0 }
 0x32a   :  { %v4363_v21 = vadd.f32 %v2747_v10, %v4280_v35 }
 0x32b   :  { %v1939_v25 = vpop.f32.mrf.mxu0 }
 0x32c   :  { %v4366_v24 = vadd.f32 %v4280_v35, %v1939_v25  ;;  %v2057_v3 = vsel %vm2002_vm1, %v4363_v21, -inf }
 0x32d   :  { %v2748_v53 = vpop.f32.mrf.mxu0  ;;  %2058 = vmax.xlane.f32.xlu0 %v2057_v3 }
 0x32e   :  { %v4371_v19 = vadd.f32 %v2748_v53, %v4280_v35  ;;  %v2051_v1 = vsel %vm2002_vm1, %v4366_v24, -inf }
 0x32f   :  { %v1942_v62 = vpop.f32.mrf.mxu0 }
 0x330   :  { %v4374_v5 = vadd.f32 %v4280_v35, %v1942_v62  ;;  %v2060_v44 = vsel %vm2002_vm1, %v4371_v19, -inf }
 0x331   :  { %2061 = vmax.xlane.f32.xlu1 %v2060_v44  ;;  %2052 = vmax.xlane.f32.xlu0 %v2051_v1 }
 0x332   :  { %v2054_v63 = vsel %vm2002_vm1, %v4374_v5, -inf }
 0x335   :  { %2055 = vmax.xlane.f32.xlu1 %v2054_v63 }
 0x339   :  { %v2751_v15 = vpop.f32.mrf.mxu0 }
 0x33a   :  { %v4383_v29 = vadd.f32 %v2751_v15, %v4280_v35 }
 0x33b   :  { %v1955_v45 = vpop.f32.mrf.mxu0 }
 0x33c   :  { %v4386_v37 = vadd.f32 %v4280_v35, %v1955_v45  ;;  %v2069_v55 = vsel %vm2002_vm1, %v4383_v29, -inf }
 0x33d   :  { %v2752_v27 = vpop.f32.mrf.mxu0  ;;  %2070 = vmax.xlane.f32.xlu0 %v2069_v55 }
 0x33e   :  { %v4391_v28 = vadd.f32 %v2752_v27, %v4280_v35  ;;  %v2063_v34 = vsel %vm2002_vm1, %v4386_v37, -inf }
 0x33f   :  { %v1958_v2 = vpop.f32.mrf.mxu0 }
 0x340   :  { %v4394_v7 = vadd.f32 %v4280_v35, %v1958_v2  ;;  %v2072_v39 = vsel %vm2002_vm1, %v4391_v28, -inf }
 0x341   :  { %2073 = vmax.xlane.f32.xlu1 %v2072_v39  ;;  %2064 = vmax.xlane.f32.xlu0 %v2063_v34 }
 0x342   :  { %v2066_v38 = vsel %vm2002_vm1, %v4394_v7, -inf }
 0x345   :  { %2067 = vmax.xlane.f32.xlu1 %v2066_v38 }
 0x349   :  { %v2755_v23 = vpop.f32.mrf.mxu0 }
 0x34a   :  { %v4403_v0 = vadd.f32 %v2755_v23, %v4280_v35 }
 0x34b   :  { %v1971_v18 = vpop.f32.mrf.mxu0 }
 0x34c   :  { %v4406_v46 = vadd.f32 %v4280_v35, %v1971_v18  ;;  %v2081_v57 = vsel %vm2002_vm1, %v4403_v0, -inf }
 0x34d   :  { %v2756_v31 = vpop.f32.mrf.mxu0  ;;  %2082 = vmax.xlane.f32.xlu0 %v2081_v57  ;;  %v2198_v57 = vld [vmem:[%s4865_s1 + $0x18] sm:$0xff] }
 0x34e   :  { %v4411_v33 = vadd.f32 %v2756_v31, %v4280_v35  ;;  %v2075_v16 = vsel %vm2002_vm1, %v4406_v46, -inf }
 0x34f   :  { %v1974_v50 = vpop.f32.mrf.mxu0 }
 0x350   :  { %v4414_v54 = vadd.f32 %v4280_v35, %v1974_v50  ;;  %v2084_v12 = vsel %vm2002_vm1, %v4411_v33, -inf }
 0x351   :  { %2085 = vmax.xlane.f32.xlu1 %v2084_v12  ;;  %2076 = vmax.xlane.f32.xlu0 %v2075_v16 }
 0x352   :  { %v2078_v52 = vsel %vm2002_vm1, %v4414_v54, -inf }
 0x355   :  { %2079 = vmax.xlane.f32.xlu1 %v2078_v52  ;;  %v2196_v52 = vld [vmem:[%s4865_s1 + $0x8] sm:$0xff] }
 0x359   :  { %v2759_v48 = vpop.f32.mrf.mxu0 }
 0x35a   :  { %v4426_v32 = vadd.f32 %v2759_v48, %v4280_v35 }
 0x35b   :  { %v1987_v43 = vpop.f32.mrf.mxu0 }
 0x35c   :  { %v4423_v14 = vadd.f32 %v4280_v35, %v1987_v43  ;;  %v2093_v11 = vsel %vm2002_vm1, %v4426_v32, -inf }
 0x35d   :  { %v2760_v17 = vpop.f32.mrf.mxu0 }
 0x35e   :  { %v2087_v42 = vsel %vm2002_vm1, %v4423_v14, -inf  ;;  %v4434_v20 = vadd.f32 %v2760_v17, %v4280_v35 }
 0x35f   :  { %v1990_v60 = vpop.f32.mrf.mxu0  ;;  %2088 = vmax.xlane.f32.xlu0 %v2087_v42 }
 0x360   :  { %v4431_v26 = vadd.f32 %v4280_v35, %v1990_v60  ;;  %v2096_v10 = vsel %vm2002_vm1, %v4434_v20, -inf }
 0x362   :  { %v2090_v8 = vsel %vm2002_vm1, %v4431_v26, -inf }
 0x363   :  { %2091 = vmax.xlane.f32.xlu1 %v2090_v8  ;;  %2094 = vmax.xlane.f32.xlu0 %v2093_v11 }
 0x367   :  { %2097 = vmax.xlane.f32.xlu1 %v2096_v10 }
 0x376   :  { %v2011_v25 = vpop.xlane.xlu1 %2010 }
 0x377   :  { %v2101_v3 = vsub.f32 %v4283_v9, %v2011_v25  ;;  %v2197_v9 = vld [vmem:[%s4865_s1 + $0x10] sm:$0xff] }
 0x378   :  { %v2005_v53 = vpop.xlane.xlu0 %2004 }
 0x379   :  { %v2135_v62 = vmul.f32 1.442695, %v2101_v3  ;;  %v2099_v35 = vsub.f32 %v4286_v41, %v2005_v53  ;;  %v2201_v53 = vld [vmem:[%s4865_s1 + $0x30] sm:$0xff] }
 0x37a   :  { %v2014_v44 = vpop.xlane.xlu1 %2013 }
 0x37b   :  { %2886 = vpow2.f32 %v2135_v62  ;;  %v2131_v1 = vmul.f32 1.442695, %v2099_v35  ;;  %v2102_v63 = vsub.f32 %v4291_v6, %v2014_v44  ;;  %v2195_v6 = vld [vmem:[%s4865_s1] sm:$0xff] }
 0x37c   :  { %v2008_v15 = vpop.xlane.xlu0 %2007 }
 0x37d   :  { %2888 = vpow2.f32 %v2131_v1  ;;  %v2137_v45 = vmul.f32 1.442695, %v2102_v63  ;;  %v2100_v55 = vsub.f32 %v4296_v47, %v2008_v15  ;;  %v2202_v15 = vld [vmem:[%s4865_s1 + $0x38] sm:$0xff] }
 0x37f   :  { %2890 = vpow2.f32 %v2137_v45  ;;  %v2133_v27 = vmul.f32 1.442695, %v2100_v55 }
 0x381   :  { %2892 = vpow2.f32 %v2133_v27 }
 0x386   :  { %v2023_v2 = vpop.xlane.xlu0 %2022 }
 0x387   :  { %v2105_v41 = vsub.f32 %v4303_v4, %v2023_v2 }
 0x388   :  { %v2887_v39 = vpop.eup %2886 }
 0x389   :  { %v2143_v34 = vmul.f32 1.442695, %v2105_v41  ;;  %v4450_v38 = vmul.f32 %v2887_v39, %v2197_v9 }
 0x38a   :  { %v2889_v23 = vpop.eup %2888  ;;  %v2026_v47 = vpop.xlane.xlu1 %2025 }
 0x38b   :  { %v2017_v18 = vpop.xlane.xlu0 %2016  ;;  %2894 = vpow2.f32 %v2143_v34  ;;  %v2106_v31 = vsub.f32 %v4311_v61, %v2026_v47  ;;  %v2265_v50 = vsel %vm2002_vm1, %v4450_v38, 0.0  ;;  %v4462_v16 = vmul.f32 %v2889_v23, %v2195_v6 }
 0x38c   :  { %v2103_v4 = vsub.f32 %v4306_v40, %v2017_v18  ;;  %v2891_v12 = vpop.eup %2890  ;;  %2266 = vadd.xlane.f32.xlu0 %v2265_v50 }
 0x38d   :  { %v2145_v48 = vmul.f32 1.442695, %v2106_v31  ;;  %v4467_v17 = vmul.f32 %v2891_v12, %v2198_v57  ;;  %v2259_v40 = vsel %vm2002_vm1, %v4462_v16, 0.0 }
 0x38e   :  { %v2139_v43 = vmul.f32 1.442695, %v2103_v4  ;;  %v2893_v42 = vpop.eup %2892  ;;  %v2020_v60 = vpop.xlane.xlu1 %2019 }
 0x38f   :  { %2896 = vpow2.f32 %v2145_v48  ;;  %v2104_v61 = vsub.f32 %v4314_v51, %v2020_v60  ;;  %v2268_v8 = vsel %vm2002_vm1, %v4467_v17, 0.0  ;;  %v4474_v11 = vmul.f32 %v2893_v42, %v2196_v52 }
 0x390   :  { %2898 = vpow2.f32 %v2139_v43  ;;  %2269 = vadd.xlane.f32.xlu1 %v2268_v8  ;;  %2260 = vadd.xlane.f32.xlu0 %v2259_v40 }
 0x391   :  { %v2141_v10 = vmul.f32 1.442695, %v2104_v61  ;;  %v2262_v25 = vsel %vm2002_vm1, %v4474_v11, 0.0  ;;  %v2206_v61 = vld [vmem:[%s4865_s1 + $0x58] sm:$0xff] }
 0x393   :  { %2900 = vpow2.f32 %v2141_v10 }
 0x394   :  { %2263 = vadd.xlane.f32.xlu1 %v2262_v25 }
 0x396   :  { %v2035_v3 = vpop.xlane.xlu0 %2034 }
 0x397   :  { %v2109_v51 = vsub.f32 %v4323_v36, %v2035_v3  ;;  %v2199_v36 = vld [vmem:[%s4865_s1 + $0x20] sm:$0xff] }
 0x398   :  { %v2895_v62 = vpop.eup %2894 }
 0x399   :  { %v2151_v35 = vmul.f32 1.442695, %v2109_v51  ;;  %v4482_v44 = vmul.f32 %v2895_v62, %v2201_v53 }
 0x39a   :  { %v2038_v1 = vpop.xlane.xlu1 %2037  ;;  %v2029_v63 = vpop.xlane.xlu0 %2028 }
 0x39b   :  { %2902 = vpow2.f32 %v2151_v35  ;;  %v2110_v45 = vsub.f32 %v4331_v56, %v2038_v1  ;;  %v2107_v55 = vsub.f32 %v4326_v58, %v2029_v63  ;;  %v2277_v27 = vsel %vm2002_vm1, %v4482_v44, 0.0  ;;  %v2200_v58 = vld [vmem:[%s4865_s1 + $0x28] sm:$0xff] }
 0x39c   :  { %v2897_v2 = vpop.eup %2896  ;;  %2278 = vadd.xlane.f32.xlu0 %v2277_v27 }
 0x39d   :  { %v2899_v9 = vpop.eup %2898  ;;  %v2153_v41 = vmul.f32 1.442695, %v2110_v45  ;;  %v2147_v39 = vmul.f32 1.442695, %v2107_v55  ;;  %v4494_v34 = vmul.f32 %v2897_v2, %v2202_v15 }
 0x39e   :  { %v2032_v6 = vpop.xlane.xlu1 %2031  ;;  %v4496_v23 = vmul.f32 %v2899_v9, %v2199_v36 }
 0x39f   :  { %2904 = vpow2.f32 %v2153_v41  ;;  %v2108_v56 = vsub.f32 %v4334_v13, %v2032_v6  ;;  %v2280_v47 = vsel %vm2002_vm1, %v4494_v34, 0.0  ;;  %v2205_v13 = vld [vmem:[%s4865_s1 + $0x50] sm:$0xff] }
 0x3a0   :  { %v2901_v18 = vpop.eup %2900  ;;  %2906 = vpow2.f32 %v2147_v39  ;;  %2281 = vadd.xlane.f32.xlu1 %v2280_v47  ;;  %v2271_v57 = vsel %vm2002_vm1, %v4496_v23, 0.0 }
 0x3a1   :  { %v2149_v31 = vmul.f32 1.442695, %v2108_v56  ;;  %2272 = vadd.xlane.f32.xlu0 %v2271_v57  ;;  %v4506_v4 = vmul.f32 %v2901_v18, %v2200_v58  ;;  %v2210_v18 = vld [vmem:[%s4865_s1 + $0x78] sm:$0xff] }
 0x3a3   :  { %2908 = vpow2.f32 %v2149_v31  ;;  %v2274_v50 = vsel %vm2002_vm1, %v4506_v4, 0.0 }
 0x3a4   :  { %2275 = vadd.xlane.f32.xlu1 %v2274_v50 }
 0x3a6   :  { %v2047_v12 = vpop.xlane.xlu0 %2046 }
 0x3a7   :  { %v2113_v52 = vsub.f32 %v4343_v49, %v2047_v12  ;;  %v2203_v49 = vld [vmem:[%s4865_s1 + $0x40] sm:$0xff] }
 0x3a8   :  { %v2903_v48 = vpop.eup %2902 }
 0x3a9   :  { %v2159_v43 = vmul.f32 1.442695, %v2113_v52  ;;  %v4514_v42 = vmul.f32 %v2903_v48, %v2205_v13 }
 0x3aa   :  { %v2050_v60 = vpop.xlane.xlu1 %2049  ;;  %v2041_v40 = vpop.xlane.xlu0 %2040 }
 0x3ab   :  { %2910 = vpow2.f32 %v2159_v43  ;;  %v2114_v8 = vsub.f32 %v4351_v59, %v2050_v60  ;;  %v2111_v10 = vsub.f32 %v4346_v30, %v2041_v40  ;;  %v2289_v25 = vsel %vm2002_vm1, %v4514_v42, 0.0  ;;  %v2204_v30 = vld [vmem:[%s4865_s1 + $0x48] sm:$0xff] }
 0x3ac   :  { %v2905_v3 = vpop.eup %2904  ;;  %2290 = vadd.xlane.f32.xlu0 %v2289_v25 }
 0x3ad   :  { %v2907_v53 = vpop.eup %2906  ;;  %v2161_v51 = vmul.f32 1.442695, %v2114_v8  ;;  %v2155_v62 = vmul.f32 1.442695, %v2111_v10  ;;  %v4526_v35 = vmul.f32 %v2905_v3, %v2206_v61 }
 0x3ae   :  { %v2044_v1 = vpop.xlane.xlu1 %2043  ;;  %v4528_v63 = vmul.f32 %v2907_v53, %v2203_v49 }
 0x3af   :  { %2912 = vpow2.f32 %v2161_v51  ;;  %v2112_v59 = vsub.f32 %v4354_v22, %v2044_v1  ;;  %v2292_v15 = vsel %vm2002_vm1, %v4526_v35, 0.0  ;;  %v2209_v22 = vld [vmem:[%s4865_s1 + $0x70] sm:$0xff] }
 0x3b0   :  { %v2909_v45 = vpop.eup %2908  ;;  %2914 = vpow2.f32 %v2155_v62  ;;  %2293 = vadd.xlane.f32.xlu1 %v2292_v15  ;;  %v2283_v55 = vsel %vm2002_vm1, %v4528_v63, 0.0 }
 0x3b1   :  { %v2157_v27 = vmul.f32 1.442695, %v2112_v59  ;;  %2284 = vadd.xlane.f32.xlu0 %v2283_v55  ;;  %v4538_v36 = vmul.f32 %v2909_v45, %v2204_v30  ;;  %v2214_v45 = vld [vmem:[%s4865_s1 + $0x98] sm:$0xff] }
 0x3b3   :  { %2916 = vpow2.f32 %v2157_v27  ;;  %v2286_v2 = vsel %vm2002_vm1, %v4538_v36, 0.0 }
 0x3b4   :  { %2287 = vadd.xlane.f32.xlu1 %v2286_v2 }
 0x3b6   :  { %v2059_v9 = vpop.xlane.xlu0 %2058 }
 0x3b7   :  { %v2117_v41 = vsub.f32 %v4363_v21, %v2059_v9  ;;  %v2207_v21 = vld [vmem:[%s4865_s1 + $0x60] sm:$0xff] }
 0x3b8   :  { %v2911_v39 = vpop.eup %2910 }
 0x3b9   :  { %v2167_v6 = vmul.f32 1.442695, %v2117_v41  ;;  %v4546_v58 = vmul.f32 %v2911_v39, %v2209_v22 }
 0x3ba   :  { %v2062_v56 = vpop.xlane.xlu1 %2061  ;;  %v2053_v47 = vpop.xlane.xlu0 %2052 }
 0x3bb   :  { %2918 = vpow2.f32 %v2167_v6  ;;  %v2118_v57 = vsub.f32 %v4371_v19, %v2062_v56  ;;  %v2115_v31 = vsub.f32 %v4366_v24, %v2053_v47  ;;  %v2301_v50 = vsel %vm2002_vm1, %v4546_v58, 0.0  ;;  %v2208_v24 = vld [vmem:[%s4865_s1 + $0x68] sm:$0xff] }
 0x3bc   :  { %v2913_v12 = vpop.eup %2912  ;;  %2302 = vadd.xlane.f32.xlu0 %v2301_v50 }
 0x3bd   :  { %v2915_v13 = vpop.eup %2914  ;;  %v2169_v52 = vmul.f32 1.442695, %v2118_v57  ;;  %v2163_v48 = vmul.f32 1.442695, %v2115_v31  ;;  %v4558_v43 = vmul.f32 %v2913_v12, %v2210_v18 }
 0x3be   :  { %v2056_v60 = vpop.xlane.xlu1 %2055  ;;  %v4560_v40 = vmul.f32 %v2915_v13, %v2207_v21 }
 0x3bf   :  { %2920 = vpow2.f32 %v2169_v52  ;;  %v2116_v19 = vsub.f32 %v4374_v5, %v2056_v60  ;;  %v2304_v61 = vsel %vm2002_vm1, %v4558_v43, 0.0  ;;  %v2213_v5 = vld [vmem:[%s4865_s1 + $0x90] sm:$0xff] }
 0x3c0   :  { %v2917_v8 = vpop.eup %2916  ;;  %2922 = vpow2.f32 %v2163_v48  ;;  %2305 = vadd.xlane.f32.xlu1 %v2304_v61  ;;  %v2295_v10 = vsel %vm2002_vm1, %v4560_v40, 0.0 }
 0x3c1   :  { %v2165_v25 = vmul.f32 1.442695, %v2116_v19  ;;  %2296 = vadd.xlane.f32.xlu0 %v2295_v10  ;;  %v4570_v49 = vmul.f32 %v2917_v8, %v2208_v24  ;;  %v2218_v8 = vld [vmem:[%s4865_s1 + $0xb8] sm:$0xff] }
 0x3c3   :  { %2924 = vpow2.f32 %v2165_v25  ;;  %v2298_v3 = vsel %vm2002_vm1, %v4570_v49, 0.0 }
 0x3c4   :  { %2299 = vadd.xlane.f32.xlu1 %v2298_v3 }
 0x3c6   :  { %v2071_v53 = vpop.xlane.xlu0 %2070 }
 0x3c7   :  { %v2121_v51 = vsub.f32 %v4383_v29, %v2071_v53  ;;  %v2211_v29 = vld [vmem:[%s4865_s1 + $0x80] sm:$0xff] }
 0x3c8   :  { %v2919_v62 = vpop.eup %2918 }
 0x3c9   :  { %v2175_v1 = vmul.f32 1.442695, %v2121_v51  ;;  %v4578_v30 = vmul.f32 %v2919_v62, %v2213_v5 }
 0x3ca   :  { %v2074_v59 = vpop.xlane.xlu1 %2073  ;;  %v2065_v15 = vpop.xlane.xlu0 %2064 }
 0x3cb   :  { %2926 = vpow2.f32 %v2175_v1  ;;  %v2122_v55 = vsub.f32 %v4391_v28, %v2074_v59  ;;  %v2119_v27 = vsub.f32 %v4386_v37, %v2065_v15  ;;  %v2313_v2 = vsel %vm2002_vm1, %v4578_v30, 0.0  ;;  %v2212_v37 = vld [vmem:[%s4865_s1 + $0x88] sm:$0xff] }
 0x3cc   :  { %v2921_v9 = vpop.eup %2920  ;;  %2314 = vadd.xlane.f32.xlu0 %v2313_v2 }
 0x3cd   :  { %v2923_v22 = vpop.eup %2922  ;;  %v2177_v41 = vmul.f32 1.442695, %v2122_v55  ;;  %v2171_v39 = vmul.f32 1.442695, %v2119_v27  ;;  %v4590_v6 = vmul.f32 %v2921_v9, %v2214_v45 }
 0x3ce   :  { %v2068_v56 = vpop.xlane.xlu1 %2067  ;;  %v4592_v47 = vmul.f32 %v2923_v22, %v2211_v29 }
 0x3cf   :  { %2928 = vpow2.f32 %v2177_v41  ;;  %v2120_v28 = vsub.f32 %v4394_v7, %v2068_v56  ;;  %v2316_v18 = vsel %vm2002_vm1, %v4590_v6, 0.0  ;;  %v2217_v7 = vld [vmem:[%s4865_s1 + $0xb0] sm:$0xff] }
 0x3d0   :  { %v2925_v57 = vpop.eup %2924  ;;  %2930 = vpow2.f32 %v2171_v39  ;;  %2317 = vadd.xlane.f32.xlu1 %v2316_v18  ;;  %v2307_v31 = vsel %vm2002_vm1, %v4592_v47, 0.0 }
 0x3d1   :  { %v2173_v50 = vmul.f32 1.442695, %v2120_v28  ;;  %2308 = vadd.xlane.f32.xlu0 %v2307_v31  ;;  %v4602_v21 = vmul.f32 %v2925_v57, %v2212_v37  ;;  %v2222_v37 = vld [vmem:[%s4865_s1 + $0xd8] sm:$0xff]  ;;  %v2219_v57 = vld [vmem:[%s4865_s1 + $0xc0] sm:$0xff] }
 0x3d3   :  { %2932 = vpow2.f32 %v2173_v50  ;;  %v2310_v12 = vsel %vm2002_vm1, %v4602_v21, 0.0 }
 0x3d4   :  { %2311 = vadd.xlane.f32.xlu1 %v2310_v12 }
 0x3d6   :  { %v2083_v13 = vpop.xlane.xlu0 %2082 }
 0x3d7   :  { %v2125_v52 = vsub.f32 %v4403_v0, %v2083_v13  ;;  %v2215_v0 = vld [vmem:[%s4865_s1 + $0xa0] sm:$0xff] }
 0x3d8   :  { %v2927_v48 = vpop.eup %2926 }
 0x3d9   :  { %v2183_v60 = vmul.f32 1.442695, %v2125_v52  ;;  %v4610_v24 = vmul.f32 %v2927_v48, %v2217_v7 }
 0x3da   :  { %v2086_v19 = vpop.xlane.xlu1 %2085  ;;  %v2077_v61 = vpop.xlane.xlu0 %2076 }
 0x3db   :  { %2934 = vpow2.f32 %v2183_v60  ;;  %v2126_v10 = vsub.f32 %v4411_v33, %v2086_v19  ;;  %v2123_v25 = vsub.f32 %v4406_v46, %v2077_v61  ;;  %v2325_v3 = vsel %vm2002_vm1, %v4610_v24, 0.0  ;;  %v2216_v46 = vld [vmem:[%s4865_s1 + $0xa8] sm:$0xff] }
 0x3dc   :  { %v2929_v53 = vpop.eup %2928  ;;  %2326 = vadd.xlane.f32.xlu0 %v2325_v3  ;;  %v2220_v60 = vld [vmem:[%s4865_s1 + $0xc8] sm:$0xff] }
 0x3dd   :  { %v2931_v5 = vpop.eup %2930  ;;  %v2185_v51 = vmul.f32 1.442695, %v2126_v10  ;;  %v2179_v62 = vmul.f32 1.442695, %v2123_v25  ;;  %v4622_v1 = vmul.f32 %v2929_v53, %v2218_v8 }
 0x3de   :  { %v2080_v59 = vpop.xlane.xlu1 %2079  ;;  %v4624_v15 = vmul.f32 %v2931_v5, %v2215_v0  ;;  %v2223_v5 = vld [vmem:[%s4865_s1 + $0xe0] sm:$0xff] }
 0x3df   :  { %2936 = vpow2.f32 %v2185_v51  ;;  %v2124_v33 = vsub.f32 %v4414_v54, %v2080_v59  ;;  %v2328_v45 = vsel %vm2002_vm1, %v4622_v1, 0.0  ;;  %v2221_v54 = vld [vmem:[%s4865_s1 + $0xd0] sm:$0xff] }
 0x3e0   :  { %v2933_v55 = vpop.eup %2932  ;;  %2938 = vpow2.f32 %v2179_v62  ;;  %2329 = vadd.xlane.f32.xlu1 %v2328_v45  ;;  %v2319_v27 = vsel %vm2002_vm1, %v4624_v15, 0.0 }
 0x3e1   :  { %v2181_v2 = vmul.f32 1.442695, %v2124_v33  ;;  %2320 = vadd.xlane.f32.xlu0 %v2319_v27  ;;  %v4634_v29 = vmul.f32 %v2933_v55, %v2216_v46  ;;  %v2225_v46 = vld [vmem:[%s4865_s1 + $0xf0] sm:$0xff] }
 0x3e3   :  { %2940 = vpow2.f32 %v2181_v2  ;;  %v2322_v9 = vsel %vm2002_vm1, %v4634_v29, 0.0  ;;  %v2226_v2 = vld [vmem:[%s4865_s1 + $0xf8] sm:$0xff] }
 0x3e4   :  { %2323 = vadd.xlane.f32.xlu1 %v2322_v9 }
 0x3e8   :  { %v2935_v22 = vpop.eup %2934  ;;  %v2089_v41 = vpop.xlane.xlu0 %2088 }
 0x3e9   :  { %v2127_v39 = vsub.f32 %v4423_v14, %v2089_v41  ;;  %v4642_v56 = vmul.f32 %v2935_v22, %v2221_v54 }
 0x3eb   :  { %v2187_v28 = vmul.f32 1.442695, %v2127_v39  ;;  %v2337_v18 = vsel %vm2002_vm1, %v4642_v56, 0.0 }
 0x3ec   :  { %v2937_v31 = vpop.eup %2936  ;;  %v2092_v50 = vpop.xlane.xlu1 %2091  ;;  %2338 = vadd.xlane.f32.xlu0 %v2337_v18 }
 0x3ed   :  { %v2095_v12 = vpop.xlane.xlu0 %2094  ;;  %v2939_v13 = vpop.eup %2938  ;;  %2942 = vpow2.f32 %v2187_v28  ;;  %v2128_v14 = vsub.f32 %v4431_v26, %v2092_v50  ;;  %v4654_v52 = vmul.f32 %v2937_v31, %v2222_v37 }
 0x3ee   :  { %v2129_v7 = vsub.f32 %v4426_v32, %v2095_v12  ;;  %v4656_v48 = vmul.f32 %v2939_v13, %v2219_v57 }
 0x3ef   :  { %v2189_v19 = vmul.f32 1.442695, %v2128_v14  ;;  %v2340_v8 = vsel %vm2002_vm1, %v4654_v52, 0.0 }
 0x3f0   :  { %v2191_v61 = vmul.f32 1.442695, %v2129_v7  ;;  %v2941_v10 = vpop.eup %2940  ;;  %v2098_v25 = vpop.xlane.xlu1 %2097  ;;  %2341 = vadd.xlane.f32.xlu1 %v2340_v8  ;;  %v2331_v26 = vsel %vm2002_vm1, %v4656_v48, 0.0 }
 0x3f1   :  { %2944 = vpow2.f32 %v2189_v19  ;;  %v2130_v32 = vsub.f32 %v4434_v20, %v2098_v25  ;;  %2332 = vadd.xlane.f32.xlu0 %v2331_v26  ;;  %v4666_v3 = vmul.f32 %v2941_v10, %v2220_v60  ;;  %v2224_v20 = vld [vmem:[%s4865_s1 + $0xe8] sm:$0xff] }
 0x3f2   :  { %2946 = vpow2.f32 %v2191_v61 }
 0x3f3   :  { %v2193_v0 = vmul.f32 1.442695, %v2130_v32  ;;  %v2334_v53 = vsel %vm2002_vm1, %v4666_v3, 0.0 }
 0x3f4   :  { %2335 = vadd.xlane.f32.xlu1 %v2334_v53 }
 0x3f5   :  { %2948 = vpow2.f32 %v2193_v0 }
 0x3fa   :  { %v2943_v51 = vpop.eup %2942 }
 0x3fb   :  { %v4673_v62 = vmul.f32 %v2943_v51, %v2223_v5 }
 0x3fd   :  { %v2343_v59 = vsel %vm2002_vm1, %v4673_v62, 0.0 }
 0x3fe   :  { %v2945_v33 = vpop.eup %2944  ;;  %2344 = vadd.xlane.f32.xlu0 %v2343_v59 }
 0x3ff   :  { %v2947_v45 = vpop.eup %2946  ;;  %v4683_v55 = vmul.f32 %v2945_v33, %v2224_v20 }
 0x400   :  { %v4685_v27 = vmul.f32 %v2947_v45, %v2225_v46 }
 0x401   :  { %v2346_v9 = vsel %vm2002_vm1, %v4683_v55, 0.0 }
 0x402   :  { %v2949_v54 = vpop.eup %2948  ;;  %2347 = vadd.xlane.f32.xlu1 %v2346_v9  ;;  %v2349_v22 = vsel %vm2002_vm1, %v4685_v27, 0.0 }
 0x403   :  { %2350 = vadd.xlane.f32.xlu0 %v2349_v22  ;;  %v4694_v41 = vmul.f32 %v2949_v54, %v2226_v2 }
 0x405   :  { %v2352_v39 = vsel %vm2002_vm1, %v4694_v41, 0.0 }
 0x406   :  { %2353 = vadd.xlane.f32.xlu1 %v2352_v39 }
 0x415   :  { %v2267_v37 = vpop.xlane.xlu0 %2266 }
 0x416   :  { %v2357_v28 = vmax.f32 %v2267_v37, 1e-12 }
 0x418   :  { %2950 = vrcp.f32 %v2357_v28 }
 0x419   :  { %v2270_v18 = vpop.xlane.xlu1 %2269  ;;  %v2261_v57 = vpop.xlane.xlu0 %2260 }
 0x41a   :  { %v2358_v31 = vmax.f32 %v2270_v18, 1e-12  ;;  %v2355_v50 = vmax.f32 %v2261_v57, 1e-12 }
 0x41c   :  { %2952 = vrcp.f32 %v2358_v31 }
 0x41d   :  { %2954 = vrcp.f32 %v2355_v50  ;;  %v2264_v12 = vpop.xlane.xlu1 %2263 }
 0x41e   :  { %v2356_v13 = vmax.f32 %v2264_v12, 1e-12 }
 0x420   :  { %2956 = vrcp.f32 %v2356_v13 }
 0x425   :  { %v2951_v14 = vpop.eup %2950  ;;  %v2279_v7 = vpop.xlane.xlu0 %2278 }
 0x426   :  { %v2421_v60 = vmul.f32 %v2951_v14, %v4450_v38  ;;  %v2361_v19 = vmax.f32 %v2279_v7, 1e-12 }
 0x428   :  { %2453 = vst.msk [vmem:[%s4866_s8 + $0x10] sm:$0xff] %vm2002_vm1, %v2421_v60  ;;  %2958 = vrcp.f32 %v2361_v19 }
 0x429   :  { %v2953_v61 = vpop.eup %2952  ;;  %v2282_v8 = vpop.xlane.xlu1 %2281 }
 0x42a   :  { %v2955_v10 = vpop.eup %2954  ;;  %v2422_v25 = vmul.f32 %v2953_v61, %v4467_v17  ;;  %v2362_v26 = vmax.f32 %v2282_v8, 1e-12  ;;  %v2273_v32 = vpop.xlane.xlu0 %2272 }
 0x42b   :  { %v2419_v0 = vmul.f32 %v2955_v10, %v4462_v16  ;;  %v2359_v53 = vmax.f32 %v2273_v32, 1e-12 }
 0x42c   :  { %2454 = vst.msk [vmem:[%s4866_s8 + $0x18] sm:$0xff] %vm2002_vm1, %v2422_v25  ;;  %2960 = vrcp.f32 %v2362_v26 }
 0x42d   :  { %v2957_v38 = vpop.eup %2956  ;;  %2451 = vst.msk [vmem:[%s4866_s8] sm:$0xff] %vm2002_vm1, %v2419_v0  ;;  %2962 = vrcp.f32 %v2359_v53  ;;  %v2276_v5 = vpop.xlane.xlu1 %2275 }
 0x42e   :  { %v2420_v17 = vmul.f32 %v2957_v38, %v4474_v11  ;;  %v2360_v51 = vmax.f32 %v2276_v5, 1e-12 }
 0x430   :  { %2452 = vst.msk [vmem:[%s4866_s8 + $0x8] sm:$0xff] %vm2002_vm1, %v2420_v17  ;;  %2964 = vrcp.f32 %v2360_v51 }
 0x435   :  { %v2959_v16 = vpop.eup %2958  ;;  %v2291_v20 = vpop.xlane.xlu0 %2290 }
 0x436   :  { %v2425_v59 = vmul.f32 %v2959_v16, %v4482_v44  ;;  %v2365_v46 = vmax.f32 %v2291_v20, 1e-12 }
 0x438   :  { %2457 = vst.msk [vmem:[%s4866_s8 + $0x30] sm:$0xff] %vm2002_vm1, %v2425_v59  ;;  %2966 = vrcp.f32 %v2365_v46 }
 0x439   :  { %v2961_v33 = vpop.eup %2960  ;;  %v2294_v11 = vpop.xlane.xlu1 %2293 }
 0x43a   :  { %v2963_v45 = vpop.eup %2962  ;;  %v2426_v2 = vmul.f32 %v2961_v33, %v4494_v34  ;;  %v2366_v9 = vmax.f32 %v2294_v11, 1e-12  ;;  %v2285_v54 = vpop.xlane.xlu0 %2284 }
 0x43b   :  { %v2423_v22 = vmul.f32 %v2963_v45, %v4496_v23  ;;  %v2363_v39 = vmax.f32 %v2285_v54, 1e-12 }
 0x43c   :  { %2458 = vst.msk [vmem:[%s4866_s8 + $0x38] sm:$0xff] %vm2002_vm1, %v2426_v2  ;;  %2968 = vrcp.f32 %v2366_v9 }
 0x43d   :  { %v2965_v44 = vpop.eup %2964  ;;  %2455 = vst.msk [vmem:[%s4866_s8 + $0x20] sm:$0xff] %vm2002_vm1, %v2423_v22  ;;  %2970 = vrcp.f32 %v2363_v39  ;;  %v2288_v37 = vpop.xlane.xlu1 %2287 }
 0x43e   :  { %v2424_v34 = vmul.f32 %v2965_v44, %v4506_v4  ;;  %v2364_v28 = vmax.f32 %v2288_v37, 1e-12 }
 0x440   :  { %2456 = vst.msk [vmem:[%s4866_s8 + $0x28] sm:$0xff] %vm2002_vm1, %v2424_v34  ;;  %2972 = vrcp.f32 %v2364_v28 }
 0x445   :  { %v2967_v23 = vpop.eup %2966  ;;  %v2303_v18 = vpop.xlane.xlu0 %2302 }
 0x446   :  { %v2429_v57 = vmul.f32 %v2967_v23, %v4514_v42  ;;  %v2369_v31 = vmax.f32 %v2303_v18, 1e-12 }
 0x448   :  { %2461 = vst.msk [vmem:[%s4866_s8 + $0x50] sm:$0xff] %vm2002_vm1, %v2429_v57  ;;  %2974 = vrcp.f32 %v2369_v31 }
 0x449   :  { %v2969_v50 = vpop.eup %2968  ;;  %v2306_v4 = vpop.xlane.xlu1 %2305 }
 0x44a   :  { %v2971_v12 = vpop.eup %2970  ;;  %v2430_v13 = vmul.f32 %v2969_v50, %v4526_v35  ;;  %v2370_v14 = vmax.f32 %v2306_v4, 1e-12  ;;  %v2297_v7 = vpop.xlane.xlu0 %2296 }
 0x44b   :  { %v2427_v60 = vmul.f32 %v2971_v12, %v4528_v63  ;;  %v2367_v19 = vmax.f32 %v2297_v7, 1e-12 }
 0x44c   :  { %2462 = vst.msk [vmem:[%s4866_s8 + $0x58] sm:$0xff] %vm2002_vm1, %v2430_v13  ;;  %2976 = vrcp.f32 %v2370_v14 }
 0x44d   :  { %v2973_v42 = vpop.eup %2972  ;;  %2459 = vst.msk [vmem:[%s4866_s8 + $0x40] sm:$0xff] %vm2002_vm1, %v2427_v60  ;;  %2978 = vrcp.f32 %v2367_v19  ;;  %v2300_v61 = vpop.xlane.xlu1 %2299 }
 0x44e   :  { %v2428_v35 = vmul.f32 %v2973_v42, %v4538_v36  ;;  %v2368_v8 = vmax.f32 %v2300_v61, 1e-12 }
 0x450   :  { %2460 = vst.msk [vmem:[%s4866_s8 + $0x48] sm:$0xff] %vm2002_vm1, %v2428_v35  ;;  %2980 = vrcp.f32 %v2368_v8 }
 0x455   :  { %v2975_v63 = vpop.eup %2974  ;;  %v2315_v10 = vpop.xlane.xlu0 %2314 }
 0x456   :  { %v2433_v25 = vmul.f32 %v2975_v63, %v4546_v58  ;;  %v2373_v26 = vmax.f32 %v2315_v10, 1e-12 }
 0x458   :  { %2465 = vst.msk [vmem:[%s4866_s8 + $0x70] sm:$0xff] %vm2002_vm1, %v2433_v25  ;;  %2982 = vrcp.f32 %v2373_v26 }
 0x459   :  { %v2977_v32 = vpop.eup %2976  ;;  %v2318_v36 = vpop.xlane.xlu1 %2317 }
 0x45a   :  { %v2979_v0 = vpop.eup %2978  ;;  %v2434_v53 = vmul.f32 %v2977_v32, %v4558_v43  ;;  %v2374_v38 = vmax.f32 %v2318_v36, 1e-12  ;;  %v2309_v5 = vpop.xlane.xlu0 %2308 }
 0x45b   :  { %v2431_v17 = vmul.f32 %v2979_v0, %v4560_v40  ;;  %v2371_v51 = vmax.f32 %v2309_v5, 1e-12 }
 0x45c   :  { %2466 = vst.msk [vmem:[%s4866_s8 + $0x78] sm:$0xff] %vm2002_vm1, %v2434_v53  ;;  %2984 = vrcp.f32 %v2374_v38 }
 0x45d   :  { %v2981_v58 = vpop.eup %2980  ;;  %2463 = vst.msk [vmem:[%s4866_s8 + $0x60] sm:$0xff] %vm2002_vm1, %v2431_v17  ;;  %2986 = vrcp.f32 %v2371_v51  ;;  %v2312_v16 = vpop.xlane.xlu1 %2311 }
 0x45e   :  { %v2432_v43 = vmul.f32 %v2981_v58, %v4570_v49  ;;  %v2372_v20 = vmax.f32 %v2312_v16, 1e-12 }
 0x460   :  { %2464 = vst.msk [vmem:[%s4866_s8 + $0x68] sm:$0xff] %vm2002_vm1, %v2432_v43  ;;  %2988 = vrcp.f32 %v2372_v20 }
 0x465   :  { %v2983_v40 = vpop.eup %2982  ;;  %v2327_v59 = vpop.xlane.xlu0 %2326 }
 0x466   :  { %v2437_v46 = vmul.f32 %v2983_v40, %v4578_v30  ;;  %v2377_v33 = vmax.f32 %v2327_v59, 1e-12 }
 0x468   :  { %2469 = vst.msk [vmem:[%s4866_s8 + $0x90] sm:$0xff] %vm2002_vm1, %v2437_v46  ;;  %2990 = vrcp.f32 %v2377_v33 }
 0x469   :  { %v2985_v11 = vpop.eup %2984  ;;  %v2330_v49 = vpop.xlane.xlu1 %2329 }
 0x46a   :  { %v2987_v45 = vpop.eup %2986  ;;  %v2438_v2 = vmul.f32 %v2985_v11, %v4590_v6  ;;  %v2378_v9 = vmax.f32 %v2330_v49, 1e-12  ;;  %v2321_v54 = vpop.xlane.xlu0 %2320 }
 0x46b   :  { %v2435_v22 = vmul.f32 %v2987_v45, %v4592_v47  ;;  %v2375_v39 = vmax.f32 %v2321_v54, 1e-12 }
 0x46c   :  { %2470 = vst.msk [vmem:[%s4866_s8 + $0x98] sm:$0xff] %vm2002_vm1, %v2438_v2  ;;  %2992 = vrcp.f32 %v2378_v9 }
 0x46d   :  { %v2989_v30 = vpop.eup %2988  ;;  %2467 = vst.msk [vmem:[%s4866_s8 + $0x80] sm:$0xff] %vm2002_vm1, %v2435_v22  ;;  %2994 = vrcp.f32 %v2375_v39  ;;  %v2324_v44 = vpop.xlane.xlu1 %2323 }
 0x46e   :  { %v2436_v6 = vmul.f32 %v2989_v30, %v4602_v21  ;;  %v2376_v37 = vmax.f32 %v2324_v44, 1e-12 }
 0x470   :  { %2468 = vst.msk [vmem:[%s4866_s8 + $0x88] sm:$0xff] %vm2002_vm1, %v2436_v6  ;;  %2996 = vrcp.f32 %v2376_v37 }
 0x475   :  { %v2991_v47 = vpop.eup %2990  ;;  %v2339_v34 = vpop.xlane.xlu0 %2338 }
 0x476   :  { %v2441_v28 = vmul.f32 %v2991_v47, %v4610_v24  ;;  %v2381_v23 = vmax.f32 %v2339_v34, 1e-12 }
 0x478   :  { %2473 = vst.msk [vmem:[%s4866_s8 + $0xb0] sm:$0xff] %vm2002_vm1, %v2441_v28  ;;  %2998 = vrcp.f32 %v2381_v23 }
 0x479   :  { %v2993_v18 = vpop.eup %2992  ;;  %v2342_v21 = vpop.xlane.xlu1 %2341 }
 0x47a   :  { %v2995_v57 = vpop.eup %2994  ;;  %v2442_v31 = vmul.f32 %v2993_v18, %v4622_v1  ;;  %v2382_v50 = vmax.f32 %v2342_v21, 1e-12  ;;  %v2333_v4 = vpop.xlane.xlu0 %2332 }
 0x47b   :  { %v2439_v12 = vmul.f32 %v2995_v57, %v4624_v15  ;;  %v2379_v13 = vmax.f32 %v2333_v4, 1e-12 }
 0x47c   :  { %2474 = vst.msk [vmem:[%s4866_s8 + $0xb8] sm:$0xff] %vm2002_vm1, %v2442_v31  ;;  %3000 = vrcp.f32 %v2382_v50 }
 0x47d   :  { %v2997_v24 = vpop.eup %2996  ;;  %2471 = vst.msk [vmem:[%s4866_s8 + $0xa0] sm:$0xff] %vm2002_vm1, %v2439_v12  ;;  %3002 = vrcp.f32 %v2379_v13  ;;  %v2336_v14 = vpop.xlane.xlu1 %2335 }
 0x47e   :  { %v2440_v1 = vmul.f32 %v2997_v24, %v4634_v29  ;;  %v2380_v7 = vmax.f32 %v2336_v14, 1e-12 }
 0x480   :  { %2472 = vst.msk [vmem:[%s4866_s8 + $0xa8] sm:$0xff] %vm2002_vm1, %v2440_v1  ;;  %3004 = vrcp.f32 %v2380_v7 }
 0x485   :  { %v2999_v15 = vpop.eup %2998 }
 0x486   :  { %v2445_v60 = vmul.f32 %v2999_v15, %v4642_v56 }
 0x487   :  { %v2345_v19 = vpop.xlane.xlu0 %2344 }
 0x488   :  { %2477 = vst.msk [vmem:[%s4866_s8 + $0xd0] sm:$0xff] %vm2002_vm1, %v2445_v60  ;;  %v2383_v42 = vmax.f32 %v2345_v19, 1e-12 }
 0x489   :  { %v3001_v61 = vpop.eup %3000 }
 0x48a   :  { %v3003_v35 = vpop.eup %3002  ;;  %v2446_v29 = vmul.f32 %v3001_v61, %v4654_v52  ;;  %3006 = vrcp.f32 %v2383_v42 }
 0x48b   :  { %v2443_v8 = vmul.f32 %v3003_v35, %v4656_v48  ;;  %v2348_v63 = vpop.xlane.xlu1 %2347 }
 0x48c   :  { %2478 = vst.msk [vmem:[%s4866_s8 + $0xd8] sm:$0xff] %vm2002_vm1, %v2446_v29  ;;  %v2384_v56 = vmax.f32 %v2348_v63, 1e-12  ;;  %v2351_v10 = vpop.xlane.xlu0 %2350 }
 0x48d   :  { %v3005_v25 = vpop.eup %3004  ;;  %2475 = vst.msk [vmem:[%s4866_s8 + $0xc0] sm:$0xff] %vm2002_vm1, %v2443_v8  ;;  %v2385_v26 = vmax.f32 %v2351_v10, 1e-12 }
 0x48e   :  { %v2444_v52 = vmul.f32 %v3005_v25, %v4666_v3  ;;  %3008 = vrcp.f32 %v2384_v56 }
 0x48f   :  { %3010 = vrcp.f32 %v2385_v26  ;;  %v2354_v48 = vpop.xlane.xlu1 %2353 }
 0x490   :  { %2476 = vst.msk [vmem:[%s4866_s8 + $0xc8] sm:$0xff] %vm2002_vm1, %v2444_v52  ;;  %v2386_v32 = vmax.f32 %v2354_v48, 1e-12 }
 0x492   :  { %3012 = vrcp.f32 %v2386_v32 }
 0x497   :  { %v3007_v36 = vpop.eup %3006 }
 0x498   :  { %v2447_v0 = vmul.f32 %v3007_v36, %v4673_v62 }
 0x49a   :  { %2479 = vst.msk [vmem:[%s4866_s8 + $0xe0] sm:$0xff] %vm2002_vm1, %v2447_v0 }
 0x49b   :  { %v3009_v53 = vpop.eup %3008 }
 0x49c   :  { %v3011_v3 = vpop.eup %3010  ;;  %v2448_v38 = vmul.f32 %v3009_v53, %v4683_v55 }
 0x49d   :  { %v2449_v5 = vmul.f32 %v3011_v3, %v4685_v27 }
 0x49e   :  { %2480 = vst.msk [vmem:[%s4866_s8 + $0xe8] sm:$0xff] %vm2002_vm1, %v2448_v38 }
 0x49f   :  { %v3013_v17 = vpop.eup %3012  ;;  %2481 = vst.msk [vmem:[%s4866_s8 + $0xf0] sm:$0xff] %vm2002_vm1, %v2449_v5 }
 0x4a0   :  { %v2450_v62 = vmul.f32 %v3013_v17, %v4694_v41 }
 0x4a2   :  { %2482 = vst.msk [vmem:[%s4866_s8 + $0xf8] sm:$0xff] %vm2002_vm1, %v2450_v62 }

</bundles_post_ra>
